<compile_context>
chip_gen: v6e
topology: v6e:2x2x1
jax: 0.10.0
libtpu: 0.0.40
codegen_flags: <defaults>
</compile_context>

<pallas_src>
import functools
import numpy as np
import jax
import jax.numpy as jnp
from jax import lax
from jax.experimental import pallas as pl
from jax.experimental.pallas import tpu as pltpu


_NEG_INF = -1e30
_LANE = 128
_SUBLANE = 8


def _round_up(n, m):
    return ((n + m - 1) // m) * m


def _cdiv(a, b):
    return -(-a // b)


def _num_tensorcores():
    try:
        dev = jax.devices()[0]
        return max(1, int(getattr(dev, "num_cores", 1) or 1))
    except Exception:
        return 1


def _vmem_cap_bytes():
    try:
        return int(pltpu.get_tpu_info().vmem_capacity_bytes)
    except Exception:
        return 64 << 20   # conservative (v7x per-TC)


# ---------------------------------------------------------------------------
# in-kernel helpers
# ---------------------------------------------------------------------------
def _masked_layernorm(x, gamma, beta, lane_mask, d_model, eps=1e-5):
    """LayerNorm over the first `d_model` lanes of a lane-padded (rows, d_pad) slab.

    gamma/beta are zero in the padded lanes, so padded lanes of the result are 0.
    """
    xm = jnp.where(lane_mask, x, 0.0)
    mu = jnp.sum(xm, axis=-1, keepdims=True) * (1.0 / d_model)
    c = jnp.where(lane_mask, x - mu, 0.0)
    var = jnp.sum(c * c, axis=-1, keepdims=True) * (1.0 / d_model)
    return c * lax.rsqrt(var + eps) * gamma + beta


# ---------------------------------------------------------------------------
# Pallas kernel: one MultiHeadAttention block for `block_b` batch elements
# ---------------------------------------------------------------------------
def _mha_kernel(num_heads, d_head, d_model, block_b, lx, ly,
                lens_x_ref, lens_y_ref,                  # scalar-prefetch (SMEM)
                x_ref, mem_ref,                          # (bt*lx, Dp), (bt*ly, Dp) bf16
                wq_ref, wkv_ref, wo_ref,                 # bf16 projections
                w1_ref, b1_ref, w2_ref, b2_ref,          # FFN (W bf16, b f32)
                g1_ref, be1_ref, g2_ref, be2_ref,        # LayerNorms (f32, lane-padded)
                o_ref):                                  # (bt*lx, Dp) f32
    mx, d_pad = x_ref.shape
    hd = num_heads * d_head
    base = pl.program_id(0) * block_b

    xb = x_ref[...]                                      # bf16 (mx, Dp)
    mb = mem_ref[...]                                    # bf16 (my, Dp)

    # Projections: one big-M matmul for Q, one fused K|V matmul (N = 2*H*dh).
    # 1/sqrt(d_head) was folded into Wq host-side.
    q2 = jnp.dot(xb, wq_ref[...], preferred_element_type=jnp.float32)   # (mx, hd)
    kv2 = jnp.dot(mb, wkv_ref[...], preferred_element_type=jnp.float32) # (my, 2*hd)

    # Layout-preserving f32 splits of the leading (sublane-major) dim.
    q3 = q2.reshape(block_b, lx, hd).astype(jnp.bfloat16)
    k3 = kv2[:, :hd].reshape(block_b, ly, hd).astype(jnp.bfloat16)
    v3 = kv2[:, hd:].reshape(block_b, ly, hd).astype(jnp.bfloat16)

    # Key-validity bias, built once per grid step: (bt, 1, ly), broadcast over
    # heads and query rows.  Fully-masked rows (query padding / padded batch
    # elements, ny == 0) produce finite garbage contexts which pack_padded
    # discards; no NaN / denom==0 path exists here.
    col = lax.broadcasted_iota(jnp.int32, (1, 1, ly), 2)
    bias_rows = []
    for bb in range(block_b):
        ny = lens_y_ref[base + bb]
        bias_rows.append(jnp.where(col < ny, 0.0, _NEG_INF))
    bias = jnp.concatenate(bias_rows, axis=0).astype(jnp.float32)  # (bt, 1, ly)

    # Per-head attention (few heads -> static unroll), batched over the batch dim.
    score_dims = (((2,), (2,)), ((0,), (0,)))   # bqd,bkd->bqk
    ctx_dims = (((2,), (1,)), ((0,), (0,)))     # bqk,bkd->bqd
    ctx_heads = []
    for h in range(num_heads):
        sl = slice(h * d_head, (h + 1) * d_head)
        e = lax.dot_general(q3[:, :, sl], k3[:, :, sl], score_dims,
                            preferred_element_type=jnp.float32)    # (bt, lx, ly)
        e = e + bias
        m = jnp.max(e, axis=-1, keepdims=True)
        p = jnp.exp(e - m)                    # masked columns underflow to 0
        denom = jnp.sum(p, axis=-1, keepdims=True)
        # approx reciprocal (EUP) -> tiny deviation vs exact 1/sum; acceptable
        # for a bf16 matmul pipeline.
        alpha = (p * pl.reciprocal(denom, approx=True)).astype(jnp.bfloat16)
        ctx_heads.append(lax.dot_general(alpha, v3[:, :, sl], ctx_dims,
                                         preferred_element_type=jnp.float32))

    # Concatenated per-head contexts -> single output projection (no scratch,
    # no masked lane-slice stores).
    ctx = jnp.concatenate(ctx_heads, axis=-1).reshape(mx, hd)
    attn_o = jnp.dot(ctx.astype(jnp.bfloat16), wo_ref[...],
                     preferred_element_type=jnp.float32)            # (mx, Dp)

    lane_mask = lax.broadcasted_iota(jnp.int32, (1, d_pad), 1) < d_model
    x2f = xb.astype(jnp.float32)

    # residual + LayerNorm (norm_in); dropout rates are 0.0 -> identity
    h1 = _masked_layernorm(x2f + attn_o, g1_ref[...], be1_ref[...],
                           lane_mask, d_model)

    # FFN: Linear -> ReLU -> Linear (bf16 operands, f32 accumulation + bias);
    # d_ff is zero-padded to a lane multiple, which is exact.
    ff = jnp.dot(h1.astype(jnp.bfloat16), w1_ref[...],
                 preferred_element_type=jnp.float32) + b1_ref[...]
    ff = jnp.maximum(ff, 0.0)
    ff = jnp.dot(ff.astype(jnp.bfloat16), w2_ref[...],
                 preferred_element_type=jnp.float32) + b2_ref[...]

    # residual + LayerNorm (norm_inter); store is lane-dense (d_pad = k*128)
    out = _masked_layernorm(h1 + ff, g2_ref[...], be2_ref[...],
                            lane_mask, d_model)
    o_ref[...] = out


# ---------------------------------------------------------------------------
# JAX wrapper around the kernel (flat, lane-dense padded tensors)
# ---------------------------------------------------------------------------
def _pick_block_b(batch, lx, ly, num_cores):
    bt = min(8, batch)
    # keep the live per-head f32 score tensor modest
    while bt > 1 and bt * lx * ly * 4 > (2 << 20):
        bt //= 2
    # Megacore (v7x, 2 TCs): prefer >= num_cores grid steps, but only when the
    # shrink keeps MXU M-fill healthy (bt*lx >= 128 rows per step).
    if num_cores > 1:
        while (bt > 1 and _cdiv(batch, bt) < num_cores
               and (bt // 2) * lx >= 128):
            bt //= 2
    return max(bt, 1)


def mha_forward_padded(params, x_flat, lens_x, mem_flat, lens_y,
                       B, Lx, Ly, num_heads, d_head, d_model):
    """x_flat: (B*Lx, d_pad) bf16, mem_flat: (B*Ly, d_pad) bf16 (zero padded)."""
    d_pad = x_flat.shape[-1]
    num_cores = _num_tensorcores()
    bt = _pick_block_b(B, Lx, Ly, num_cores)
    B_pad = _round_up(B, bt)
    if B_pad != B:
        x_flat = jnp.pad(x_flat, ((0, (B_pad - B) * Lx), (0, 0)))
        mem_flat = jnp.pad(mem_flat, ((0, (B_pad - B) * Ly), (0, 0)))
        lens_x = jnp.pad(lens_x, (0, B_pad - B))
        lens_y = jnp.pad(lens_y, (0, B_pad - B))

    kernel = functools.partial(_mha_kernel, num_heads, d_head, d_model,
                               bt, Lx, Ly)

    _w = lambda i, a, b: (0, 0)          # full-array weight blocks
    in_specs = [
        pl.BlockSpec((bt * Lx, d_pad), lambda i, a, b: (i, 0)),
        pl.BlockSpec((bt * Ly, d_pad), lambda i, a, b: (i, 0)),
        pl.BlockSpec(params["wq"].shape, _w),
        pl.BlockSpec(params["wkv"].shape, _w),
        pl.BlockSpec(params["wo"].shape, _w),
        pl.BlockSpec(params["w1"].shape, _w),
        pl.BlockSpec(params["b1"].shape, _w),
        pl.BlockSpec(params["w2"].shape, _w),
        pl.BlockSpec(params["b2"].shape, _w),
        pl.BlockSpec(params["g1"].shape, _w),
        pl.BlockSpec(params["be1"].shape, _w),
        pl.BlockSpec(params["g2"].shape, _w),
        pl.BlockSpec(params["be2"].shape, _w),
    ]

    # VMEM budget: double-buffered activation blocks + weights + headroom,
    # clamped to half of this chip's VMEM (<=32 MiB on v7x, <=64 MiB v5e/v6e).
    def nbytes(a):
        return int(np.prod(a.shape)) * a.dtype.itemsize
    act_in = 2 * bt * (Lx + Ly) * d_pad            # bf16 inputs
    act_out = 4 * bt * Lx * d_pad                  # f32 output
    w_bytes = sum(nbytes(params[kk]) for kk in
                  ("wq", "wkv", "wo", "w1", "b1", "w2", "b2",
                   "g1", "be1", "g2", "be2"))
    needed = 2 * (act_in + act_out + w_bytes) + (8 << 20)
    cap = _vmem_cap_bytes()
    vmem_limit = int(min(max(needed, 16 << 20), cap // 2))

    grid_spec = pltpu.PrefetchScalarGridSpec(
        num_scalar_prefetch=2,
        grid=(B_pad // bt,),
        in_specs=in_specs,
        out_specs=pl.BlockSpec((bt * Lx, d_pad), lambda i, a, b: (i, 0)),
    )

    out = pl.pallas_call(
        kernel,
        out_shape=jax.ShapeDtypeStruct((B_pad * Lx, d_pad), jnp.float32),
        grid_spec=grid_spec,
        compiler_params=pltpu.CompilerParams(
            dimension_semantics=("parallel",),
            vmem_limit_bytes=vmem_limit),
    )(lens_x.astype(jnp.int32), lens_y.astype(jnp.int32), x_flat, mem_flat,
      params["wq"], params["wkv"], params["wo"],
      params["w1"], params["b1"], params["w2"], params["b2"],
      params["g1"], params["be1"], params["g2"], params["be2"])
    return out[:B * Lx]


# ---------------------------------------------------------------------------
# pad_packed / pack_padded glue (single scatter / gather from static indices)
# ---------------------------------------------------------------------------
def _pack_indices(lengths):
    lengths = np.asarray(lengths, np.int64)
    offsets = np.concatenate([[0], np.cumsum(lengths)[:-1]])
    bidx = np.repeat(np.arange(len(lengths)), lengths)
    pidx = np.arange(int(lengths.sum())) - np.repeat(offsets, lengths)
    return bidx, pidx


def pad_packed_flat(feat, lengths, max_len, d_pad, dtype=jnp.bfloat16):
    """(sum(lengths), d) packed rows -> (B*max_len, d_pad) zero-padded, flat."""
    _, d = feat.shape
    bidx, pidx = _pack_indices(lengths)
    rows = bidx * max_len + pidx
    featp = jnp.pad(feat.astype(dtype), ((0, 0), (0, d_pad - d)))
    out = jnp.zeros((len(lengths) * max_len, d_pad), dtype)
    return out.at[rows].set(featp)


def pack_padded_flat(padded_flat, lengths, max_len, d_model):
    bidx, pidx = _pack_indices(lengths)
    rows = bidx * max_len + pidx
    return padded_flat[rows][:, :d_model]


# ---------------------------------------------------------------------------
# Packed-tensor API matching MultiHeadAttention.forward(x, mem, len_x, len_mem)
# ---------------------------------------------------------------------------
def multi_head_attention(params, x, mem, lengths_x, lengths_mem,
                         num_heads, d_head, d_model):
    d_pad = params["g1"].shape[-1]
    B = len(lengths_x)
    Lx = _round_up(int(max(lengths_x)), _SUBLANE)
    Ly = _round_up(int(max(lengths_mem)), _SUBLANE)
    xf = pad_packed_flat(x, lengths_x, Lx, d_pad, jnp.bfloat16)
    mf = pad_packed_flat(mem, lengths_mem, Ly, d_pad, jnp.bfloat16)
    lens_x = jnp.asarray(lengths_x, jnp.int32)
    lens_y = jnp.asarray(lengths_mem, jnp.int32)
    out = mha_forward_padded(params, xf, lens_x, mf, lens_y,
                             B, Lx, Ly, num_heads, d_head, d_model)
    return pack_padded_flat(out, lengths_x, Lx, d_model)


# ---------------------------------------------------------------------------
# Parameters: raw init (torch-shaped) + one-time host-side preparation
# ---------------------------------------------------------------------------
def _xavier_uniform(key, shape):
    a = float(np.sqrt(6.0 / (shape[0] + shape[1])))
    return jax.random.uniform(key, shape, jnp.float32, -a, a)


def init_mha_params(key, d_model, num_heads, d_head, d_ff):
    ks = jax.random.split(key, 6)
    return dict(
        wq=_xavier_uniform(ks[0], (d_model, num_heads * d_head)),
        wk=_xavier_uniform(ks[1], (d_model, num_heads * d_head)),
        wv=_xavier_uniform(ks[2], (d_model, num_heads * d_head)),
        wo=_xavier_uniform(ks[3], (num_heads * d_head, d_model)),
        w1=_xavier_uniform(ks[4], (d_model, d_ff)),
        b1=jnp.zeros((d_ff,), jnp.float32),
        w2=_xavier_uniform(ks[5], (d_ff, d_model)),
        b2=jnp.zeros((d_model,), jnp.float32),
        g1=jnp.ones((d_model,), jnp.float32),
        be1=jnp.zeros((d_model,), jnp.float32),
        g2=jnp.ones((d_model,), jnp.float32),
        be2=jnp.zeros((d_model,), jnp.float32),
    )


def prepare_mha_params(raw, d_model, num_heads, d_head, d_ff):
    """One-time host-side prep: pad the feature dim and d_ff to lane multiples
    (128), fuse Wk|Wv, fold 1/sqrt(d_head) into Wq, cast matmul weights to
    bfloat16 (halves weight DMA)."""
    d_pad = _round_up(d_model, _LANE)
    dff_pad = _round_up(d_ff, _LANE)
    hd = num_heads * d_head
    scale = 1.0 / float(np.sqrt(d_head))

    def pad2(w, rows, cols):
        return jnp.pad(w, ((0, rows - w.shape[0]), (0, cols - w.shape[1])))

    pad_vec = lambda v: jnp.pad(v, (0, d_pad - d_model)).reshape(1, d_pad)
    wkv = jnp.concatenate([raw["wk"], raw["wv"]], axis=1)
    return dict(
        wq=pad2(raw["wq"] * scale, d_pad, hd).astype(jnp.bfloat16),
        wkv=pad2(wkv, d_pad, 2 * hd).astype(jnp.bfloat16),
        wo=pad2(raw["wo"], hd, d_pad).astype(jnp.bfloat16),
        w1=pad2(raw["w1"], d_pad, dff_pad).astype(jnp.bfloat16),
        b1=jnp.pad(raw["b1"], (0, dff_pad - d_ff)).reshape(1, dff_pad)
            .astype(jnp.float32),
        w2=pad2(raw["w2"], dff_pad, d_pad).astype(jnp.bfloat16),
        b2=pad_vec(raw["b2"]),
        g1=pad_vec(raw["g1"]), be1=pad_vec(raw["be1"]),
        g2=pad_vec(raw["g2"]), be2=pad_vec(raw["be2"]),
    )


# ---------------------------------------------------------------------------
if __name__ == "__main__":
    key = jax.random.PRNGKey(0)
    d_model, n_heads, d_head, d_ff = 32, 4, 8, 64
    lengths = [3, 5, 4, 6]                    # a batch of 4 small node sets
    n = sum(lengths)

    key, kf, kp = jax.random.split(key, 3)
    feat = jax.random.normal(kf, (n, d_model), jnp.float32)

    kp1, kp2 = jax.random.split(kp)
    p1 = prepare_mha_params(init_mha_params(kp1, d_model, n_heads, d_head, d_ff),
                            d_model, n_heads, d_head, d_ff)
    p2 = prepare_mha_params(init_mha_params(kp2, d_model, n_heads, d_head, d_ff),
                            d_model, n_heads, d_head, d_ff)

    # two stacked SAB blocks (self-attention): mem == x, lengths_mem == lengths_x
    h = multi_head_attention(p1, feat, feat, lengths, lengths,
                             n_heads, d_head, d_model)
    h = multi_head_attention(p2, h, h, lengths, lengths,
                             n_heads, d_head, d_model)
    h = jax.block_until_ready(h)

    assert h.shape == (n, d_model), h.shape
    assert bool(jnp.all(jnp.isfinite(h)))
    print("KERNEL_OK")
</pallas_src>

<mosaic_0001>
module attributes {stable_mosaic.version = 11 : i64} {
  func.func @_mha_kernel(%arg0: i32, %arg1: memref<4xi32, #tpu.memory_space<smem>>, %arg2: memref<4xi32, #tpu.memory_space<smem>>, %arg3: memref<32x128xbf16, #tpu.memory_space<vmem>>, %arg4: memref<32x128xbf16, #tpu.memory_space<vmem>>, %arg5: memref<128x32xbf16, #tpu.memory_space<vmem>>, %arg6: memref<128x64xbf16, #tpu.memory_space<vmem>>, %arg7: memref<32x128xbf16, #tpu.memory_space<vmem>>, %arg8: memref<128x128xbf16, #tpu.memory_space<vmem>>, %arg9: memref<1x128xf32, #tpu.memory_space<vmem>>, %arg10: memref<128x128xbf16, #tpu.memory_space<vmem>>, %arg11: memref<1x128xf32, #tpu.memory_space<vmem>>, %arg12: memref<1x128xf32, #tpu.memory_space<vmem>>, %arg13: memref<1x128xf32, #tpu.memory_space<vmem>>, %arg14: memref<1x128xf32, #tpu.memory_space<vmem>>, %arg15: memref<1x128xf32, #tpu.memory_space<vmem>>, %arg16: memref<32x128xf32, #tpu.memory_space<vmem>>) attributes {dimension_semantics = [#tpu.dimension_semantics<parallel>], iteration_bounds = array<i64: 1>, scalar_prefetch = 2 : i64, scratch_operands = 0 : i64, tpu.core_type = #tpu.core_type<tc>, window_params = [{transform_indices = @transform_0, window_bounds = array<i64: 32, 128>}, {transform_indices = @transform_1, window_bounds = array<i64: 32, 128>}, {pipeline_mode = #tpu.pipeline_mode<synchronous>, transform_indices = @transform_2, window_bounds = array<i64: 128, 32>}, {pipeline_mode = #tpu.pipeline_mode<synchronous>, transform_indices = @transform_3, window_bounds = array<i64: 128, 64>}, {pipeline_mode = #tpu.pipeline_mode<synchronous>, transform_indices = @transform_4, window_bounds = array<i64: 32, 128>}, {pipeline_mode = #tpu.pipeline_mode<synchronous>, transform_indices = @transform_5, window_bounds = array<i64: 128, 128>}, {pipeline_mode = #tpu.pipeline_mode<synchronous>, transform_indices = @transform_6, window_bounds = array<i64: 1, 128>}, {pipeline_mode = #tpu.pipeline_mode<synchronous>, transform_indices = @transform_7, window_bounds = array<i64: 128, 128>}, {pipeline_mode = #tpu.pipeline_mode<synchronous>, transform_indices = @transform_8, window_bounds = array<i64: 1, 128>}, {pipeline_mode = #tpu.pipeline_mode<synchronous>, transform_indices = @transform_9, window_bounds = array<i64: 1, 128>}, {pipeline_mode = #tpu.pipeline_mode<synchronous>, transform_indices = @transform_10, window_bounds = array<i64: 1, 128>}, {pipeline_mode = #tpu.pipeline_mode<synchronous>, transform_indices = @transform_11, window_bounds = array<i64: 1, 128>}, {pipeline_mode = #tpu.pipeline_mode<synchronous>, transform_indices = @transform_12, window_bounds = array<i64: 1, 128>}, {transform_indices = @transform_13, window_bounds = array<i64: 32, 128>}]} {
    %c4_i32 = arith.constant 4 : i32
    %0 = arith.muli %arg0, %c4_i32 : i32
    %c0 = arith.constant 0 : index
    %c0_0 = arith.constant 0 : index
    %1 = vector.load %arg3[%c0, %c0_0] : memref<32x128xbf16, #tpu.memory_space<vmem>>, vector<32x128xbf16>
    %c0_1 = arith.constant 0 : index
    %c0_2 = arith.constant 0 : index
    %2 = vector.load %arg4[%c0_1, %c0_2] : memref<32x128xbf16, #tpu.memory_space<vmem>>, vector<32x128xbf16>
    %c0_3 = arith.constant 0 : index
    %c0_4 = arith.constant 0 : index
    %3 = vector.load %arg5[%c0_3, %c0_4] : memref<128x32xbf16, #tpu.memory_space<vmem>>, vector<128x32xbf16>
    %cst = arith.constant dense<0.000000e+00> : vector<32x32xf32>
    %4 = tpu.matmul %1, %3, %cst {dimension_numbers = #tpu.dot_dimension_numbers<[1], [0], [0], [1], [0, 0, 1, 1], [], []>} : vector<32x128xbf16>, vector<128x32xbf16>, vector<32x32xf32> -> vector<32x32xf32>
    %c0_5 = arith.constant 0 : index
    %c0_6 = arith.constant 0 : index
    %5 = vector.load %arg6[%c0_5, %c0_6] : memref<128x64xbf16, #tpu.memory_space<vmem>>, vector<128x64xbf16>
    %cst_7 = arith.constant dense<0.000000e+00> : vector<32x64xf32>
    %6 = tpu.matmul %2, %5, %cst_7 {dimension_numbers = #tpu.dot_dimension_numbers<[1], [0], [0], [1], [0, 0, 1, 1], [], []>} : vector<32x128xbf16>, vector<128x64xbf16>, vector<32x64xf32> -> vector<32x64xf32>
    %7 = vector.shape_cast %4 : vector<32x32xf32> to vector<4x8x32xf32>
    %8 = arith.truncf %7 : vector<4x8x32xf32> to vector<4x8x32xbf16>
    %9 = vector.extract_strided_slice %6 {offsets = [0, 0], sizes = [32, 32], strides = [1, 1]} : vector<32x64xf32> to vector<32x32xf32>
    %10 = vector.shape_cast %9 : vector<32x32xf32> to vector<4x8x32xf32>
    %11 = arith.truncf %10 : vector<4x8x32xf32> to vector<4x8x32xbf16>
    %12 = vector.extract_strided_slice %6 {offsets = [0, 32], sizes = [32, 32], strides = [1, 1]} : vector<32x64xf32> to vector<32x32xf32>
    %13 = vector.shape_cast %12 : vector<32x32xf32> to vector<4x8x32xf32>
    %14 = arith.truncf %13 : vector<4x8x32xf32> to vector<4x8x32xbf16>
    %15 = tpu.iota {dimensions = array<i32: 2>} : vector<1x1x8xi32>
    %c0_i32 = arith.constant 0 : i32
    %16 = arith.addi %0, %c0_i32 : i32
    %17 = arith.index_cast %16 : i32 to index
    %18 = memref.load %arg2[%17] : memref<4xi32, #tpu.memory_space<smem>>
    %19 = vector.broadcast %18 : i32 to vector<1x1x8xi32>
    %20 = arith.cmpi slt, %15, %19 : vector<1x1x8xi32>
    %cst_8 = arith.constant 0.000000e+00 : f32
    %cst_9 = arith.constant -1.000000e+30 : f32
    %21 = vector.broadcast %cst_8 : f32 to vector<1x1x8xf32>
    %22 = vector.broadcast %cst_9 : f32 to vector<1x1x8xf32>
    %23 = arith.select %20, %21, %22 : vector<1x1x8xi1>, vector<1x1x8xf32>
    %c1_i32 = arith.constant 1 : i32
    %24 = arith.addi %0, %c1_i32 : i32
    %25 = arith.index_cast %24 : i32 to index
    %26 = memref.load %arg2[%25] : memref<4xi32, #tpu.memory_space<smem>>
    %27 = vector.broadcast %26 : i32 to vector<1x1x8xi32>
    %28 = arith.cmpi slt, %15, %27 : vector<1x1x8xi32>
    %cst_10 = arith.constant 0.000000e+00 : f32
    %cst_11 = arith.constant -1.000000e+30 : f32
    %29 = vector.broadcast %cst_10 : f32 to vector<1x1x8xf32>
    %30 = vector.broadcast %cst_11 : f32 to vector<1x1x8xf32>
    %31 = arith.select %28, %29, %30 : vector<1x1x8xi1>, vector<1x1x8xf32>
    %c2_i32 = arith.constant 2 : i32
    %32 = arith.addi %0, %c2_i32 : i32
    %33 = arith.index_cast %32 : i32 to index
    %34 = memref.load %arg2[%33] : memref<4xi32, #tpu.memory_space<smem>>
    %35 = vector.broadcast %34 : i32 to vector<1x1x8xi32>
    %36 = arith.cmpi slt, %15, %35 : vector<1x1x8xi32>
    %cst_12 = arith.constant 0.000000e+00 : f32
    %cst_13 = arith.constant -1.000000e+30 : f32
    %37 = vector.broadcast %cst_12 : f32 to vector<1x1x8xf32>
    %38 = vector.broadcast %cst_13 : f32 to vector<1x1x8xf32>
    %39 = arith.select %36, %37, %38 : vector<1x1x8xi1>, vector<1x1x8xf32>
    %c3_i32 = arith.constant 3 : i32
    %40 = arith.addi %0, %c3_i32 : i32
    %41 = arith.index_cast %40 : i32 to index
    %42 = memref.load %arg2[%41] : memref<4xi32, #tpu.memory_space<smem>>
    %43 = vector.broadcast %42 : i32 to vector<1x1x8xi32>
    %44 = arith.cmpi slt, %15, %43 : vector<1x1x8xi32>
    %cst_14 = arith.constant 0.000000e+00 : f32
    %cst_15 = arith.constant -1.000000e+30 : f32
    %45 = vector.broadcast %cst_14 : f32 to vector<1x1x8xf32>
    %46 = vector.broadcast %cst_15 : f32 to vector<1x1x8xf32>
    %47 = arith.select %44, %45, %46 : vector<1x1x8xi1>, vector<1x1x8xf32>
    %48 = tpu.concatenate %23, %31, %39, %47 in 0 : vector<1x1x8xf32>, vector<1x1x8xf32>, vector<1x1x8xf32>, vector<1x1x8xf32> -> vector<4x1x8xf32>
    %49 = vector.extract_strided_slice %8 {offsets = [0, 0, 0], sizes = [4, 8, 8], strides = [1, 1, 1]} : vector<4x8x32xbf16> to vector<4x8x8xbf16>
    %50 = vector.extract_strided_slice %11 {offsets = [0, 0, 0], sizes = [4, 8, 8], strides = [1, 1, 1]} : vector<4x8x32xbf16> to vector<4x8x8xbf16>
    %cst_16 = arith.constant dense<0.000000e+00> : vector<4x8x8xf32>
    %51 = tpu.matmul %49, %50, %cst_16 {dimension_numbers = #tpu.dot_dimension_numbers<[2], [2], [1], [1], [0, 0, 0, 1, 1, 1], [0], [0]>} : vector<4x8x8xbf16>, vector<4x8x8xbf16>, vector<4x8x8xf32> -> vector<4x8x8xf32>
    %52 = vector.broadcast %48 : vector<4x1x8xf32> to vector<4x8x8xf32>
    %53 = arith.addf %51, %52 : vector<4x8x8xf32>
    %cst_17 = arith.constant dense<0xFF800000> : vector<4x8xf32>
    %54 = vector.multi_reduction <maximumf>, %53, %cst_17 [2] : vector<4x8x8xf32> to vector<4x8xf32>
    %55 = vector.shape_cast %54 : vector<4x8xf32> to vector<4x8x1xf32>
    %56 = vector.broadcast %55 : vector<4x8x1xf32> to vector<4x8x8xf32>
    %57 = arith.subf %53, %56 : vector<4x8x8xf32>
    %58 = math.exp %57 : vector<4x8x8xf32>
    %cst_18 = arith.constant dense<0.000000e+00> : vector<4x8xf32>
    %59 = vector.multi_reduction <add>, %58, %cst_18 [2] : vector<4x8x8xf32> to vector<4x8xf32>
    %60 = vector.shape_cast %59 : vector<4x8xf32> to vector<4x8x1xf32>
    %61 = tpu.reciprocal %60 {approx = true} : vector<4x8x1xf32> -> vector<4x8x1xf32>
    %62 = vector.broadcast %61 : vector<4x8x1xf32> to vector<4x8x8xf32>
    %63 = arith.mulf %58, %62 : vector<4x8x8xf32>
    %64 = arith.truncf %63 : vector<4x8x8xf32> to vector<4x8x8xbf16>
    %65 = vector.extract_strided_slice %14 {offsets = [0, 0, 0], sizes = [4, 8, 8], strides = [1, 1, 1]} : vector<4x8x32xbf16> to vector<4x8x8xbf16>
    %cst_19 = arith.constant dense<0.000000e+00> : vector<4x8x8xf32>
    %66 = tpu.matmul %64, %65, %cst_19 {dimension_numbers = #tpu.dot_dimension_numbers<[2], [1], [1], [2], [0, 0, 0, 1, 1, 2], [0], [0]>} : vector<4x8x8xbf16>, vector<4x8x8xbf16>, vector<4x8x8xf32> -> vector<4x8x8xf32>
    %67 = vector.extract_strided_slice %8 {offsets = [0, 0, 8], sizes = [4, 8, 8], strides = [1, 1, 1]} : vector<4x8x32xbf16> to vector<4x8x8xbf16>
    %68 = vector.extract_strided_slice %11 {offsets = [0, 0, 8], sizes = [4, 8, 8], strides = [1, 1, 1]} : vector<4x8x32xbf16> to vector<4x8x8xbf16>
    %cst_20 = arith.constant dense<0.000000e+00> : vector<4x8x8xf32>
    %69 = tpu.matmul %67, %68, %cst_20 {dimension_numbers = #tpu.dot_dimension_numbers<[2], [2], [1], [1], [0, 0, 0, 1, 1, 1], [0], [0]>} : vector<4x8x8xbf16>, vector<4x8x8xbf16>, vector<4x8x8xf32> -> vector<4x8x8xf32>
    %70 = vector.broadcast %48 : vector<4x1x8xf32> to vector<4x8x8xf32>
    %71 = arith.addf %69, %70 : vector<4x8x8xf32>
    %cst_21 = arith.constant dense<0xFF800000> : vector<4x8xf32>
    %72 = vector.multi_reduction <maximumf>, %71, %cst_21 [2] : vector<4x8x8xf32> to vector<4x8xf32>
    %73 = vector.shape_cast %72 : vector<4x8xf32> to vector<4x8x1xf32>
    %74 = vector.broadcast %73 : vector<4x8x1xf32> to vector<4x8x8xf32>
    %75 = arith.subf %71, %74 : vector<4x8x8xf32>
    %76 = math.exp %75 : vector<4x8x8xf32>
    %cst_22 = arith.constant dense<0.000000e+00> : vector<4x8xf32>
    %77 = vector.multi_reduction <add>, %76, %cst_22 [2] : vector<4x8x8xf32> to vector<4x8xf32>
    %78 = vector.shape_cast %77 : vector<4x8xf32> to vector<4x8x1xf32>
    %79 = tpu.reciprocal %78 {approx = true} : vector<4x8x1xf32> -> vector<4x8x1xf32>
    %80 = vector.broadcast %79 : vector<4x8x1xf32> to vector<4x8x8xf32>
    %81 = arith.mulf %76, %80 : vector<4x8x8xf32>
    %82 = arith.truncf %81 : vector<4x8x8xf32> to vector<4x8x8xbf16>
    %83 = vector.extract_strided_slice %14 {offsets = [0, 0, 8], sizes = [4, 8, 8], strides = [1, 1, 1]} : vector<4x8x32xbf16> to vector<4x8x8xbf16>
    %cst_23 = arith.constant dense<0.000000e+00> : vector<4x8x8xf32>
    %84 = tpu.matmul %82, %83, %cst_23 {dimension_numbers = #tpu.dot_dimension_numbers<[2], [1], [1], [2], [0, 0, 0, 1, 1, 2], [0], [0]>} : vector<4x8x8xbf16>, vector<4x8x8xbf16>, vector<4x8x8xf32> -> vector<4x8x8xf32>
    %85 = vector.extract_strided_slice %8 {offsets = [0, 0, 16], sizes = [4, 8, 8], strides = [1, 1, 1]} : vector<4x8x32xbf16> to vector<4x8x8xbf16>
    %86 = vector.extract_strided_slice %11 {offsets = [0, 0, 16], sizes = [4, 8, 8], strides = [1, 1, 1]} : vector<4x8x32xbf16> to vector<4x8x8xbf16>
    %cst_24 = arith.constant dense<0.000000e+00> : vector<4x8x8xf32>
    %87 = tpu.matmul %85, %86, %cst_24 {dimension_numbers = #tpu.dot_dimension_numbers<[2], [2], [1], [1], [0, 0, 0, 1, 1, 1], [0], [0]>} : vector<4x8x8xbf16>, vector<4x8x8xbf16>, vector<4x8x8xf32> -> vector<4x8x8xf32>
    %88 = vector.broadcast %48 : vector<4x1x8xf32> to vector<4x8x8xf32>
    %89 = arith.addf %87, %88 : vector<4x8x8xf32>
    %cst_25 = arith.constant dense<0xFF800000> : vector<4x8xf32>
    %90 = vector.multi_reduction <maximumf>, %89, %cst_25 [2] : vector<4x8x8xf32> to vector<4x8xf32>
    %91 = vector.shape_cast %90 : vector<4x8xf32> to vector<4x8x1xf32>
    %92 = vector.broadcast %91 : vector<4x8x1xf32> to vector<4x8x8xf32>
    %93 = arith.subf %89, %92 : vector<4x8x8xf32>
    %94 = math.exp %93 : vector<4x8x8xf32>
    %cst_26 = arith.constant dense<0.000000e+00> : vector<4x8xf32>
    %95 = vector.multi_reduction <add>, %94, %cst_26 [2] : vector<4x8x8xf32> to vector<4x8xf32>
    %96 = vector.shape_cast %95 : vector<4x8xf32> to vector<4x8x1xf32>
    %97 = tpu.reciprocal %96 {approx = true} : vector<4x8x1xf32> -> vector<4x8x1xf32>
    %98 = vector.broadcast %97 : vector<4x8x1xf32> to vector<4x8x8xf32>
    %99 = arith.mulf %94, %98 : vector<4x8x8xf32>
    %100 = arith.truncf %99 : vector<4x8x8xf32> to vector<4x8x8xbf16>
    %101 = vector.extract_strided_slice %14 {offsets = [0, 0, 16], sizes = [4, 8, 8], strides = [1, 1, 1]} : vector<4x8x32xbf16> to vector<4x8x8xbf16>
    %cst_27 = arith.constant dense<0.000000e+00> : vector<4x8x8xf32>
    %102 = tpu.matmul %100, %101, %cst_27 {dimension_numbers = #tpu.dot_dimension_numbers<[2], [1], [1], [2], [0, 0, 0, 1, 1, 2], [0], [0]>} : vector<4x8x8xbf16>, vector<4x8x8xbf16>, vector<4x8x8xf32> -> vector<4x8x8xf32>
    %103 = vector.extract_strided_slice %8 {offsets = [0, 0, 24], sizes = [4, 8, 8], strides = [1, 1, 1]} : vector<4x8x32xbf16> to vector<4x8x8xbf16>
    %104 = vector.extract_strided_slice %11 {offsets = [0, 0, 24], sizes = [4, 8, 8], strides = [1, 1, 1]} : vector<4x8x32xbf16> to vector<4x8x8xbf16>
    %cst_28 = arith.constant dense<0.000000e+00> : vector<4x8x8xf32>
    %105 = tpu.matmul %103, %104, %cst_28 {dimension_numbers = #tpu.dot_dimension_numbers<[2], [2], [1], [1], [0, 0, 0, 1, 1, 1], [0], [0]>} : vector<4x8x8xbf16>, vector<4x8x8xbf16>, vector<4x8x8xf32> -> vector<4x8x8xf32>
    %106 = vector.broadcast %48 : vector<4x1x8xf32> to vector<4x8x8xf32>
    %107 = arith.addf %105, %106 : vector<4x8x8xf32>
    %cst_29 = arith.constant dense<0xFF800000> : vector<4x8xf32>
    %108 = vector.multi_reduction <maximumf>, %107, %cst_29 [2] : vector<4x8x8xf32> to vector<4x8xf32>
    %109 = vector.shape_cast %108 : vector<4x8xf32> to vector<4x8x1xf32>
    %110 = vector.broadcast %109 : vector<4x8x1xf32> to vector<4x8x8xf32>
    %111 = arith.subf %107, %110 : vector<4x8x8xf32>
    %112 = math.exp %111 : vector<4x8x8xf32>
    %cst_30 = arith.constant dense<0.000000e+00> : vector<4x8xf32>
    %113 = vector.multi_reduction <add>, %112, %cst_30 [2] : vector<4x8x8xf32> to vector<4x8xf32>
    %114 = vector.shape_cast %113 : vector<4x8xf32> to vector<4x8x1xf32>
    %115 = tpu.reciprocal %114 {approx = true} : vector<4x8x1xf32> -> vector<4x8x1xf32>
    %116 = vector.broadcast %115 : vector<4x8x1xf32> to vector<4x8x8xf32>
    %117 = arith.mulf %112, %116 : vector<4x8x8xf32>
    %118 = arith.truncf %117 : vector<4x8x8xf32> to vector<4x8x8xbf16>
    %119 = vector.extract_strided_slice %14 {offsets = [0, 0, 24], sizes = [4, 8, 8], strides = [1, 1, 1]} : vector<4x8x32xbf16> to vector<4x8x8xbf16>
    %cst_31 = arith.constant dense<0.000000e+00> : vector<4x8x8xf32>
    %120 = tpu.matmul %118, %119, %cst_31 {dimension_numbers = #tpu.dot_dimension_numbers<[2], [1], [1], [2], [0, 0, 0, 1, 1, 2], [0], [0]>} : vector<4x8x8xbf16>, vector<4x8x8xbf16>, vector<4x8x8xf32> -> vector<4x8x8xf32>
    %121 = tpu.concatenate %66, %84, %102, %120 in 2 : vector<4x8x8xf32>, vector<4x8x8xf32>, vector<4x8x8xf32>, vector<4x8x8xf32> -> vector<4x8x32xf32>
    %122 = vector.shape_cast %121 : vector<4x8x32xf32> to vector<32x32xf32>
    %123 = arith.truncf %122 : vector<32x32xf32> to vector<32x32xbf16>
    %c0_32 = arith.constant 0 : index
    %c0_33 = arith.constant 0 : index
    %124 = vector.load %arg7[%c0_32, %c0_33] : memref<32x128xbf16, #tpu.memory_space<vmem>>, vector<32x128xbf16>
    %cst_34 = arith.constant dense<0.000000e+00> : vector<32x128xf32>
    %125 = tpu.matmul %123, %124, %cst_34 {dimension_numbers = #tpu.dot_dimension_numbers<[1], [0], [0], [1], [0, 0, 1, 1], [], []>} : vector<32x32xbf16>, vector<32x128xbf16>, vector<32x128xf32> -> vector<32x128xf32>
    %126 = tpu.iota {dimensions = array<i32: 1>} : vector<1x128xi32>
    %c32_i32 = arith.constant 32 : i32
    %127 = vector.broadcast %c32_i32 : i32 to vector<1x128xi32>
    %128 = arith.cmpi slt, %126, %127 : vector<1x128xi32>
    %129 = arith.extf %1 : vector<32x128xbf16> to vector<32x128xf32>
    %130 = arith.addf %129, %125 : vector<32x128xf32>
    %c0_35 = arith.constant 0 : index
    %c0_36 = arith.constant 0 : index
    %131 = vector.load %arg12[%c0_35, %c0_36] : memref<1x128xf32, #tpu.memory_space<vmem>>, vector<1x128xf32>
    %c0_37 = arith.constant 0 : index
    %c0_38 = arith.constant 0 : index
    %132 = vector.load %arg13[%c0_37, %c0_38] : memref<1x128xf32, #tpu.memory_space<vmem>>, vector<1x128xf32>
    %cst_39 = arith.constant 0.000000e+00 : f32
    %133 = vector.shape_cast %128 : vector<1x128xi1> to vector<1x128xi1>
    %134 = vector.broadcast %133 : vector<1x128xi1> to vector<32x128xi1>
    %135 = vector.broadcast %cst_39 : f32 to vector<32x128xf32>
    %136 = arith.select %134, %130, %135 : vector<32x128xi1>, vector<32x128xf32>
    %cst_40 = arith.constant dense<0.000000e+00> : vector<32xf32>
    %137 = vector.multi_reduction <add>, %136, %cst_40 [1] : vector<32x128xf32> to vector<32xf32>
    %138 = vector.shape_cast %137 : vector<32xf32> to vector<32x1xf32>
    %cst_41 = arith.constant 3.125000e-02 : f32
    %139 = vector.broadcast %cst_41 : f32 to vector<32x1xf32>
    %140 = arith.mulf %138, %139 : vector<32x1xf32>
    %141 = vector.broadcast %140 : vector<32x1xf32> to vector<32x128xf32>
    %142 = arith.subf %130, %141 : vector<32x128xf32>
    %cst_42 = arith.constant 0.000000e+00 : f32
    %143 = vector.shape_cast %128 : vector<1x128xi1> to vector<1x128xi1>
    %144 = vector.broadcast %143 : vector<1x128xi1> to vector<32x128xi1>
    %145 = vector.broadcast %cst_42 : f32 to vector<32x128xf32>
    %146 = arith.select %144, %142, %145 : vector<32x128xi1>, vector<32x128xf32>
    %147 = arith.mulf %146, %146 : vector<32x128xf32>
    %cst_43 = arith.constant dense<0.000000e+00> : vector<32xf32>
    %148 = vector.multi_reduction <add>, %147, %cst_43 [1] : vector<32x128xf32> to vector<32xf32>
    %149 = vector.shape_cast %148 : vector<32xf32> to vector<32x1xf32>
    %cst_44 = arith.constant 3.125000e-02 : f32
    %150 = vector.broadcast %cst_44 : f32 to vector<32x1xf32>
    %151 = arith.mulf %149, %150 : vector<32x1xf32>
    %cst_45 = arith.constant 9.99999974E-6 : f32
    %152 = vector.broadcast %cst_45 : f32 to vector<32x1xf32>
    %153 = arith.addf %151, %152 : vector<32x1xf32>
    %154 = math.rsqrt %153 : vector<32x1xf32>
    %155 = vector.broadcast %154 : vector<32x1xf32> to vector<32x128xf32>
    %156 = arith.mulf %146, %155 : vector<32x128xf32>
    %157 = vector.broadcast %131 : vector<1x128xf32> to vector<32x128xf32>
    %158 = arith.mulf %156, %157 : vector<32x128xf32>
    %159 = vector.broadcast %132 : vector<1x128xf32> to vector<32x128xf32>
    %160 = arith.addf %158, %159 : vector<32x128xf32>
    %161 = arith.truncf %160 : vector<32x128xf32> to vector<32x128xbf16>
    %c0_46 = arith.constant 0 : index
    %c0_47 = arith.constant 0 : index
    %162 = vector.load %arg8[%c0_46, %c0_47] : memref<128x128xbf16, #tpu.memory_space<vmem>>, vector<128x128xbf16>
    %cst_48 = arith.constant dense<0.000000e+00> : vector<32x128xf32>
    %163 = tpu.matmul %161, %162, %cst_48 {dimension_numbers = #tpu.dot_dimension_numbers<[1], [0], [0], [1], [0, 0, 1, 1], [], []>} : vector<32x128xbf16>, vector<128x128xbf16>, vector<32x128xf32> -> vector<32x128xf32>
    %c0_49 = arith.constant 0 : index
    %c0_50 = arith.constant 0 : index
    %164 = vector.load %arg9[%c0_49, %c0_50] : memref<1x128xf32, #tpu.memory_space<vmem>>, vector<1x128xf32>
    %165 = vector.broadcast %164 : vector<1x128xf32> to vector<32x128xf32>
    %166 = arith.addf %163, %165 : vector<32x128xf32>
    %cst_51 = arith.constant 0.000000e+00 : f32
    %167 = vector.broadcast %cst_51 : f32 to vector<32x128xf32>
    %168 = arith.maximumf %166, %167 : vector<32x128xf32>
    %169 = arith.truncf %168 : vector<32x128xf32> to vector<32x128xbf16>
    %c0_52 = arith.constant 0 : index
    %c0_53 = arith.constant 0 : index
    %170 = vector.load %arg10[%c0_52, %c0_53] : memref<128x128xbf16, #tpu.memory_space<vmem>>, vector<128x128xbf16>
    %cst_54 = arith.constant dense<0.000000e+00> : vector<32x128xf32>
    %171 = tpu.matmul %169, %170, %cst_54 {dimension_numbers = #tpu.dot_dimension_numbers<[1], [0], [0], [1], [0, 0, 1, 1], [], []>} : vector<32x128xbf16>, vector<128x128xbf16>, vector<32x128xf32> -> vector<32x128xf32>
    %c0_55 = arith.constant 0 : index
    %c0_56 = arith.constant 0 : index
    %172 = vector.load %arg11[%c0_55, %c0_56] : memref<1x128xf32, #tpu.memory_space<vmem>>, vector<1x128xf32>
    %173 = vector.broadcast %172 : vector<1x128xf32> to vector<32x128xf32>
    %174 = arith.addf %171, %173 : vector<32x128xf32>
    %175 = arith.addf %160, %174 : vector<32x128xf32>
    %c0_57 = arith.constant 0 : index
    %c0_58 = arith.constant 0 : index
    %176 = vector.load %arg14[%c0_57, %c0_58] : memref<1x128xf32, #tpu.memory_space<vmem>>, vector<1x128xf32>
    %c0_59 = arith.constant 0 : index
    %c0_60 = arith.constant 0 : index
    %177 = vector.load %arg15[%c0_59, %c0_60] : memref<1x128xf32, #tpu.memory_space<vmem>>, vector<1x128xf32>
    %cst_61 = arith.constant 0.000000e+00 : f32
    %178 = vector.shape_cast %128 : vector<1x128xi1> to vector<1x128xi1>
    %179 = vector.broadcast %178 : vector<1x128xi1> to vector<32x128xi1>
    %180 = vector.broadcast %cst_61 : f32 to vector<32x128xf32>
    %181 = arith.select %179, %175, %180 : vector<32x128xi1>, vector<32x128xf32>
    %cst_62 = arith.constant dense<0.000000e+00> : vector<32xf32>
    %182 = vector.multi_reduction <add>, %181, %cst_62 [1] : vector<32x128xf32> to vector<32xf32>
    %183 = vector.shape_cast %182 : vector<32xf32> to vector<32x1xf32>
    %cst_63 = arith.constant 3.125000e-02 : f32
    %184 = vector.broadcast %cst_63 : f32 to vector<32x1xf32>
    %185 = arith.mulf %183, %184 : vector<32x1xf32>
    %186 = vector.broadcast %185 : vector<32x1xf32> to vector<32x128xf32>
    %187 = arith.subf %175, %186 : vector<32x128xf32>
    %cst_64 = arith.constant 0.000000e+00 : f32
    %188 = vector.shape_cast %128 : vector<1x128xi1> to vector<1x128xi1>
    %189 = vector.broadcast %188 : vector<1x128xi1> to vector<32x128xi1>
    %190 = vector.broadcast %cst_64 : f32 to vector<32x128xf32>
    %191 = arith.select %189, %187, %190 : vector<32x128xi1>, vector<32x128xf32>
    %192 = arith.mulf %191, %191 : vector<32x128xf32>
    %cst_65 = arith.constant dense<0.000000e+00> : vector<32xf32>
    %193 = vector.multi_reduction <add>, %192, %cst_65 [1] : vector<32x128xf32> to vector<32xf32>
    %194 = vector.shape_cast %193 : vector<32xf32> to vector<32x1xf32>
    %cst_66 = arith.constant 3.125000e-02 : f32
    %195 = vector.broadcast %cst_66 : f32 to vector<32x1xf32>
    %196 = arith.mulf %194, %195 : vector<32x1xf32>
    %cst_67 = arith.constant 9.99999974E-6 : f32
    %197 = vector.broadcast %cst_67 : f32 to vector<32x1xf32>
    %198 = arith.addf %196, %197 : vector<32x1xf32>
    %199 = math.rsqrt %198 : vector<32x1xf32>
    %200 = vector.broadcast %199 : vector<32x1xf32> to vector<32x128xf32>
    %201 = arith.mulf %191, %200 : vector<32x128xf32>
    %202 = vector.broadcast %176 : vector<1x128xf32> to vector<32x128xf32>
    %203 = arith.mulf %201, %202 : vector<32x128xf32>
    %204 = vector.broadcast %177 : vector<1x128xf32> to vector<32x128xf32>
    %205 = arith.addf %203, %204 : vector<32x128xf32>
    %c0_68 = arith.constant 0 : index
    %c0_69 = arith.constant 0 : index
    %206 = vector.load %arg16[%c0_68, %c0_69] : memref<32x128xf32, #tpu.memory_space<vmem>>, vector<32x128xf32>
    tpu.vector_store %arg16[%c0_68, %c0_69], %205 {strides = array<i32>} : memref<32x128xf32, #tpu.memory_space<vmem>>, vector<32x128xf32>,
    return
  }
  func.func @transform_0(%arg0: i32, %arg1: memref<4xi32, #tpu.memory_space<smem>>, %arg2: memref<4xi32, #tpu.memory_space<smem>>) -> (i32, i32) {
    %c0_i32 = arith.constant 0 : i32
    %c0_i32_0 = arith.constant 0 : i32
    return %arg0, %c0_i32 : i32, i32
  }
  func.func @transform_1(%arg0: i32, %arg1: memref<4xi32, #tpu.memory_space<smem>>, %arg2: memref<4xi32, #tpu.memory_space<smem>>) -> (i32, i32) {
    %c0_i32 = arith.constant 0 : i32
    %c0_i32_0 = arith.constant 0 : i32
    return %arg0, %c0_i32 : i32, i32
  }
  func.func @transform_2(%arg0: i32, %arg1: memref<4xi32, #tpu.memory_space<smem>>, %arg2: memref<4xi32, #tpu.memory_space<smem>>) -> (i32, i32) {
    %c0_i32 = arith.constant 0 : i32
    %c0_i32_0 = arith.constant 0 : i32
    %c0_i32_1 = arith.constant 0 : i32
    return %c0_i32, %c0_i32_0 : i32, i32
  }
  func.func @transform_3(%arg0: i32, %arg1: memref<4xi32, #tpu.memory_space<smem>>, %arg2: memref<4xi32, #tpu.memory_space<smem>>) -> (i32, i32) {
    %c0_i32 = arith.constant 0 : i32
    %c0_i32_0 = arith.constant 0 : i32
    %c0_i32_1 = arith.constant 0 : i32
    return %c0_i32, %c0_i32_0 : i32, i32
  }
  func.func @transform_4(%arg0: i32, %arg1: memref<4xi32, #tpu.memory_space<smem>>, %arg2: memref<4xi32, #tpu.memory_space<smem>>) -> (i32, i32) {
    %c0_i32 = arith.constant 0 : i32
    %c0_i32_0 = arith.constant 0 : i32
    %c0_i32_1 = arith.constant 0 : i32
    return %c0_i32, %c0_i32_0 : i32, i32
  }
  func.func @transform_5(%arg0: i32, %arg1: memref<4xi32, #tpu.memory_space<smem>>, %arg2: memref<4xi32, #tpu.memory_space<smem>>) -> (i32, i32) {
    %c0_i32 = arith.constant 0 : i32
    %c0_i32_0 = arith.constant 0 : i32
    %c0_i32_1 = arith.constant 0 : i32
    return %c0_i32, %c0_i32_0 : i32, i32
  }
  func.func @transform_6(%arg0: i32, %arg1: memref<4xi32, #tpu.memory_space<smem>>, %arg2: memref<4xi32, #tpu.memory_space<smem>>) -> (i32, i32) {
    %c0_i32 = arith.constant 0 : i32
    %c0_i32_0 = arith.constant 0 : i32
    %c0_i32_1 = arith.constant 0 : i32
    return %c0_i32, %c0_i32_0 : i32, i32
  }
  func.func @transform_7(%arg0: i32, %arg1: memref<4xi32, #tpu.memory_space<smem>>, %arg2: memref<4xi32, #tpu.memory_space<smem>>) -> (i32, i32) {
    %c0_i32 = arith.constant 0 : i32
    %c0_i32_0 = arith.constant 0 : i32
    %c0_i32_1 = arith.constant 0 : i32
    return %c0_i32, %c0_i32_0 : i32, i32
  }
  func.func @transform_8(%arg0: i32, %arg1: memref<4xi32, #tpu.memory_space<smem>>, %arg2: memref<4xi32, #tpu.memory_space<smem>>) -> (i32, i32) {
    %c0_i32 = arith.constant 0 : i32
    %c0_i32_0 = arith.constant 0 : i32
    %c0_i32_1 = arith.constant 0 : i32
    return %c0_i32, %c0_i32_0 : i32, i32
  }
  func.func @transform_9(%arg0: i32, %arg1: memref<4xi32, #tpu.memory_space<smem>>, %arg2: memref<4xi32, #tpu.memory_space<smem>>) -> (i32, i32) {
    %c0_i32 = arith.constant 0 : i32
    %c0_i32_0 = arith.constant 0 : i32
    %c0_i32_1 = arith.constant 0 : i32
    return %c0_i32, %c0_i32_0 : i32, i32
  }
  func.func @transform_10(%arg0: i32, %arg1: memref<4xi32, #tpu.memory_space<smem>>, %arg2: memref<4xi32, #tpu.memory_space<smem>>) -> (i32, i32) {
    %c0_i32 = arith.constant 0 : i32
    %c0_i32_0 = arith.constant 0 : i32
    %c0_i32_1 = arith.constant 0 : i32
    return %c0_i32, %c0_i32_0 : i32, i32
  }
  func.func @transform_11(%arg0: i32, %arg1: memref<4xi32, #tpu.memory_space<smem>>, %arg2: memref<4xi32, #tpu.memory_space<smem>>) -> (i32, i32) {
    %c0_i32 = arith.constant 0 : i32
    %c0_i32_0 = arith.constant 0 : i32
    %c0_i32_1 = arith.constant 0 : i32
    return %c0_i32, %c0_i32_0 : i32, i32
  }
  func.func @transform_12(%arg0: i32, %arg1: memref<4xi32, #tpu.memory_space<smem>>, %arg2: memref<4xi32, #tpu.memory_space<smem>>) -> (i32, i32) {
    %c0_i32 = arith.constant 0 : i32
    %c0_i32_0 = arith.constant 0 : i32
    %c0_i32_1 = arith.constant 0 : i32
    return %c0_i32, %c0_i32_0 : i32, i32
  }
  func.func @transform_13(%arg0: i32, %arg1: memref<4xi32, #tpu.memory_space<smem>>, %arg2: memref<4xi32, #tpu.memory_space<smem>>) -> (i32, i32) {
    %c0_i32 = arith.constant 0 : i32
    %c0_i32_0 = arith.constant 0 : i32
    return %arg0, %c0_i32 : i32, i32
  }
}

</mosaic_0001>

<bundles_post_ra>
// kernel: tpu_custom_call.1
= control target key start
LH: loop header
LB: loop body
LE: loop exit
PB: predicated region body
PF: predicated region fallthrough
CT: control target
= control target key end

     0   :  { %s4087_s0 = inlined_call_operand.vmem [shape: s32[4], index: 0, kind: input, shape index: {}]   ;;  %s4088_s2 = inlined_call_operand.vmem [shape: bf16[32,128], index: 2, kind: input, shape index: {}]   ;;  %s4089_s3 = inlined_call_operand.hbm [shape: bf16[32,128], index: 3, kind: input, shape index: {}]   ;;  %s4090_s4 = inlined_call_operand.vmem [shape: bf16[128,32], index: 4, kind: input, shape index: {}]   ;;  %s4091_s5 = inlined_call_operand.vmem [shape: bf16[128,64], index: 5, kind: input, shape index: {}]   ;;  %s4092_s6 = inlined_call_operand.hbm [shape: bf16[32,128], index: 6, kind: input, shape index: {}]   ;;  %s4093_s7 = inlined_call_operand.vmem [shape: bf16[128,128], index: 7, kind: input, shape index: {}]   ;;  %s4094_s8 = inlined_call_operand.vmem [shape: f32[1,128], index: 8, kind: input, shape index: {}]   ;;  %s4095_s9 = inlined_call_operand.vmem [shape: bf16[128,128], index: 9, kind: input, shape index: {}]   ;;  %s4096_s10 = inlined_call_operand.vmem [shape: f32[1,128], index: 10, kind: input, shape index: {}]   ;;  %s4097_s11 = inlined_call_operand.vmem [shape: f32[1,128], index: 11, kind: input, shape index: {}]   ;;  %s4098_s12 = inlined_call_operand.vmem [shape: f32[1,128], index: 12, kind: input, shape index: {}]   ;;  %s4099_s13 = inlined_call_operand.vmem [shape: f32[1,128], index: 13, kind: input, shape index: {}]   ;;  %s4100_s14 = inlined_call_operand.vmem [shape: f32[1,128], index: 14, kind: input, shape index: {}]   ;;  %s4101_s15 = inlined_call_operand.hbm [shape: f32[32,128], index: 15, kind: output, shape index: {}]   ;;  %s4102_s1 = inlined_call_operand.hbm [shape: s32[4], index: 1, kind: input, shape index: {}]  }
   0x1   :  { %s20_s20 = sshll.u32 %s4087_s0, 4  ;;  %s21_s20 = int_to_ptr.vmem [resolvable:$true] %s20_s20 }
   0x2   :  { %s3353_s21 = scalar_lea.vmem %s21_s20, 16  ;;  %p3358_p1 = scmp.lt.s32.totalorder %s21_s20, %s21_s20 }
   0x3   :  { %p3354_p0 = scmp.ne.s32.totalorder %s21_s20, %s3353_s21  ;;  %p3359_p2 = scmp.lt.s32.totalorder %s3353_s21, %s3353_s21 }
   0x5   :  { %p3360_p3 = por %p3359_p2, %p3358_p1 }
   0x7   :  { %p3361_p4 = pnand %p3360_p3, %p3354_p0 }
   0x9   :  { %3364 = shalt.err (!%p3361_p4)  }
   0xa   :  { %s3441_s22 = smov [#allocation3]   ;;  %s3442_s23 = smov [#allocation4]  }
   0xb   :  { %23 = dma.vmem_to_smem %s21_s20, 16, %s3441_s22, [#allocation2] }
   0xc   :  { %25 = dma.hbm_to_smem %s4102_s1, 16, %s3442_s23, [#allocation2] }
   0xd   :  { %3433 = dma.done.wait [#allocation2], 32 }
   0xe   :  { %3434 = vsyncadd [#allocation2], 4294967264 }
   0xf   :  { %27 = sfence }
  0x10   :  { %28 = vsyncpa [#allocation6], 0 }
  0x11   :  { %29 = vsyncpa [#allocation9], 0 }
  0x12   :  { %30 = vsyncpa [#allocation7], 0  ;;  %s3443_s0 = smov [#allocation5]  }
  0x13   :  { %s38_s26 = sshll.u32 %s3443_s0, 4  ;;  %s39_s26 = int_to_ptr.vmem [resolvable:$true] %s38_s26 }
  0x14   :  { %s3381_s27 = scalar_lea.vmem %s39_s26, 256  ;;  %p3386_p6 = scmp.lt.s32.totalorder %s39_s26, %s39_s26 }
  0x15   :  { %p3382_p5 = scmp.ne.s32.totalorder %s39_s26, %s3381_s27  ;;  %p3387_p7 = scmp.lt.s32.totalorder %s3381_s27, %s3381_s27 }
  0x17   :  { %p3388_p8 = por %p3387_p7, %p3386_p6 }
  0x19   :  { %p3389_p9 = pnand %p3388_p8, %p3382_p5 }
  0x1b   :  { %3392 = shalt.err (!%p3389_p9)
}
  0x1c   :  { %s3444_s28 = smov 64   ;;  %s3445_s29 = smov 4  }
  0x1d   :  { %44 = dma.hbm_to_vmem [thread:$0]  %s4089_s3, 256, %s39_s26, [#allocation6], %s3444_s28, %s3444_s28, %s3445_s29  }
  0x1e   :  { %s3446_s16 = smov [#allocation8]  }
  0x1f   :  { %s54_s17 = sshll.u32 %s3446_s16, 4  ;;  %s55_s17 = int_to_ptr.vmem [resolvable:$true] %s54_s17 }
  0x20   :  { %s3401_s18 = scalar_lea.vmem %s55_s17, 256  ;;  %p3406_p11 = scmp.lt.s32.totalorder %s55_s17, %s55_s17 }
  0x21   :  { %p3402_p10 = scmp.ne.s32.totalorder %s55_s17, %s3401_s18  ;;  %p3407_p12 = scmp.lt.s32.totalorder %s3401_s18, %s3401_s18 }
  0x23   :  { %p3408_p13 = por %p3407_p12, %p3406_p11 }
  0x25   :  { %p3409_p0 = pnand %p3408_p13, %p3402_p10 }
  0x27   :  { %3412 = shalt.err (!%p3409_p0)
}
  0x28   :  { %60 = dma.hbm_to_vmem [thread:$0]  %s4092_s6, 256, %s55_s17, [#allocation9], %s3444_s28, %s3444_s28, %s3445_s29  }
  0x29   :  { %3435 = dma.done.wait [#allocation6], 256  }
  0x2a   :  { %3436 = vsyncadd [#allocation6], 4294967040 }
  0x2b   :  { %3437 = dma.done.wait [#allocation9], 256  }
  0x2c   :  { %3438 = vsyncadd [#allocation9], 4294967040  ;;  %v3231_v0 = vld [vmem:[%s4091_s5 + $0x38] sm:$0xff]   ;;  %v3233_v2 = vld [vmem:[%s4091_s5 + $0x30] sm:$0xff]   ;;  %v3447_v20 = vmov 0.0   ;;  %vm3448_vm0 = vmmov 0   ;;  %v351_v41 = vlaneseq }
  0x2d   :  { %v3232_v1 = vld [vmem:[%s4090_s4 + $0x38] sm:$0xff]   ;;  %2920 = vmatprep.subr.bf16.mxu1 %v3231_v0  ;;  %v3234_v3 = vld [vmem:[%s4090_s4 + $0x30] sm:$0xff]   ;;  %v3235_v4 = vld [vmem:[%s4091_s5 + $0x28] sm:$0xff]   ;;  %vm388_vm1 = vcmask 64512   ;;  %s2732_s19 = sld [smem:[#allocation4 + $0x2]]  ;;  %s3450_s21 = smov 96  }
  0x2e   :  { %2921 = vmatpush3.bf16.msra.mxu1 %v3231_v0  ;;  %2900 = vmatprep.subr.bf16.mxu0 %v3232_v1  ;;  %v3236_v5 = vld [vmem:[%s4090_s4 + $0x28] sm:$0xff]   ;;  %v3237_v6 = vld [vmem:[%s4091_s5 + $0x20] sm:$0xff]   ;;  %v3239_v8 = vld [vmem:[%s4091_s5 + $0x18] sm:$0xff]   ;;  %v3658_v42 = vand.u32 127, %v351_v41  ;;  %v373_v44 = vshrl.u32 %v351_v41, 7  ;;  %s2733_s20 = sld [smem:[#allocation4 + $0x3]] }
  0x2f   :  { %2901 = vmatpush3.bf16.msra.mxu0 %v3232_v1  ;;  %2922 = vmatprep.subr.bf16.mxu1 %v3233_v2  ;;  %v3238_v7 = vld [vmem:[%s4090_s4 + $0x20] sm:$0xff]   ;;  %v3240_v9 = vld [vmem:[%s4090_s4 + $0x18] sm:$0xff]   ;;  %v3241_v10 = vld [vmem:[%s4091_s5 + $0x10] sm:$0xff]   ;;  %v3449_v47 = vmov -1e+30   ;;  %vm627_vm6 = vcmask 1043456  }
  0x30   :  { %2902 = vmatprep.subr.bf16.mxu0 %v3234_v3  ;;  %v3247_v11 = vld [vmem:[#allocation5] sm:$0xff]   ;;  %v3242_v12 = vld [vmem:[%s4090_s4 + $0x10] sm:$0xff]   ;;  %v3243_v13 = vld [vmem:[%s4091_s5 + $0x8] sm:$0xff]   ;;  %v374_v46 = vsub.s32 0, %v373_v44  ;;  %s3451_s3 = smov 120   ;;  %s3452_s22 = smov 88  }
  0x31   :  { %2936 = vmatprep.mubr.bf16.mxu1 %v3247_v11  ;;  %v85_v14 = vld [vmem:[%s4088_s2] sm:$0xff]   ;;  %v3244_v15 = vld [vmem:[%s4090_s4 + $0x8] sm:$0xff]   ;;  %s3453_s23 = smov 112   ;;  %s3454_s24 = smov 80   ;;  %vm2194_vm7 = vcmask 130048   ;;  %vm2199_vm8 = vcmask 195584  }
  0x32   :  { %2923 = vmatpush3.bf16.msra.mxu1 %v3233_v2  ;;  %2916 = vmatprep.mubr.bf16.mxu0 %v85_v14  ;;  %v3245_v16 = vld [vmem:[%s4091_s5] sm:$0xff]   ;;  %v87_v18 = vld [vmem:[%s4088_s2 + $0x8] sm:$0xff]   ;;  %s2731_s5 = sld [smem:[#allocation4 + $0x1]]  ;;  %s3455_s25 = smov 104   ;;  %vm2222_vm9 = vcmask 261120   ;;  %vm2278_vm10 = vcmp.lt.s32.totalorder %v3658_v42, 32 }
  0x33   :  { %2903 = vmatpush3.bf16.msra.mxu0 %v3234_v3  ;;  %2924 = vmatprep.subr.bf16.mxu1 %v3235_v4  ;;  %v3246_v17 = vld [vmem:[%s4090_s4] sm:$0xff]   ;;  %v3248_v19 = vld [vmem:[#allocation5 + $0x8] sm:$0xff]   ;;  %s353_s4 = sld [smem:[#allocation4]]  ;;  %v364_v49 = vstv %s2732_s19  ;;  %s3456_s6 = smov 72  }
  0x34   :  { %2904 = vmatprep.subr.bf16.mxu0 %v3236_v5  ;;  %vm365_vm4 = vcmp.lt.s32.totalorder %v3658_v42, %v364_v49  ;;  %v369_v53 = vstv %s2733_s20  ;;  %s3457_s0 = smov 8   ;;  %s3458_s26 = smov 16  }
  0x35   :  { %v366_v57 = vsel %vm365_vm4, 0.0, %v3449_v47  ;;  %vm370_vm5 = vcmp.lt.s32.totalorder %v3658_v42, %v369_v53  ;;  %s3459_s27 = smov 24   ;;  %s3460_s28 = smov [#allocation10]  }
  0x36   :  { %2925 = vmatpush3.bf16.msra.mxu1 %v3235_v4  ;;  %v3671_v62 = vrot.slane %v366_v57, %v374_v46  ;;  %v371_v1 = vsel %vm370_vm5, 0.0, %v3449_v47 }
  0x37   :  { %2905 = vmatpush3.bf16.msra.mxu0 %v3236_v5  ;;  %2926 = vmatprep.subr.bf16.mxu1 %v3237_v6 }
  0x38   :  { %2906 = vmatprep.subr.bf16.mxu0 %v3238_v7  ;;  %v359_v45 = vstv %s2731_s5 }
  0x39   :  { %v354_v43 = vstv %s353_s4  ;;  %vm360_vm3 = vcmp.lt.s32.totalorder %v3658_v42, %v359_v45 }
  0x3a   :  { %2927 = vmatpush3.bf16.msra.mxu1 %v3237_v6  ;;  %vm355_vm2 = vcmp.lt.s32.totalorder %v3658_v42, %v354_v43  ;;  %v361_v51 = vsel %vm360_vm3, 0.0, %v3449_v47  ;;  %v3675_v6 = vrot.slane %v371_v1, %v374_v46 }
  0x3b   :  { %2907 = vmatpush3.bf16.msra.mxu0 %v3238_v7  ;;  %2928 = vmatprep.subr.bf16.mxu1 %v3239_v8  ;;  %v356_v48 = vsel %vm355_vm2, 0.0, %v3449_v47  ;;  %v3666_v55 = vrot.slane %v361_v51, %v374_v46 }
  0x3c   :  { %2908 = vmatprep.subr.bf16.mxu0 %v3240_v9  ;;  %v3662_v50 = vrot.slane %v356_v48, %v374_v46 }
  0x3e   :  { %2929 = vmatpush3.bf16.msra.mxu1 %v3239_v8 }
  0x3f   :  { %2909 = vmatpush3.bf16.msra.mxu0 %v3240_v9  ;;  %2930 = vmatprep.subr.bf16.mxu1 %v3241_v10 }
  0x40   :  { %2910 = vmatprep.subr.bf16.mxu0 %v3242_v12 }
  0x42   :  { %2931 = vmatpush3.bf16.msra.mxu1 %v3241_v10 }
  0x43   :  { %2911 = vmatpush3.bf16.msra.mxu0 %v3242_v12  ;;  %2932 = vmatprep.subr.bf16.mxu1 %v3243_v13 }
  0x44   :  { %2912 = vmatprep.subr.bf16.mxu0 %v3244_v15 }
  0x46   :  { %2933 = vmatpush3.bf16.msra.mxu1 %v3243_v13 }
  0x47   :  { %2913 = vmatpush3.bf16.msra.mxu0 %v3244_v15  ;;  %2934 = vmatprep.subr.bf16.mxu1 %v3245_v16 }
  0x48   :  { %2914 = vmatprep.subr.bf16.mxu0 %v3246_v17 }
  0x4a   :  { %2935 = vmatpush3.bf16.msra.mxu1 %v3245_v16 }
  0x4b   :  { %2915 = vmatpush3.bf16.msra.mxu0 %v3246_v17  ;;  %2946 = vmatprep.subr.bf16.mxu1 %v3447_v20 }
  0x4c   :  { %2940 = vmatprep.subr.bf16.mxu0 %v3447_v20 }
  0x4d   :  { %2937 = vmatmul.mubr.bf16.vlgmr.msra.gmra.mxu1 %v3248_v19 }
  0x4e   :  { %2917 = vmatmul.mubr.bf16.vlgmr.msra.gmra.mxu0 %v87_v18  ;;  %2948 = vmatprep.mubr.msk.bf16.mxu1 %vm3448_vm0, %v3447_v20 }
  0x4f   :  { %2942 = vmatprep.mubr.msk.bf16.mxu0 %vm3448_vm0, %v3447_v20 }
 0x10d   :  { %v2938_v21 = vpop.f32.mrf.mxu1 }
 0x10e   :  { %v2918_v22 = vpop.f32.mrf.mxu0  ;;  %v3621_v31 = vpack.c.bf16 %v2938_v21, %v2938_v21 }
 0x10f   :  { %v328_v23 = vpop.f32.mrf.mxu1  ;;  %v3645_v39 = vpack.c.bf16 %v2918_v22, %v2918_v22 }
 0x110   :  { %v3614_v24 = vpack.c.bf16 %v328_v23, %v328_v23  ;;  %v203_v26 = vpop.f32.mrf.mxu0  ;;  %v485_v36 = vsel %vm388_vm1, %v3621_v31, 0 }
 0x111   :  { %v2939_v25 = vpop.f32.mrf.mxu1  ;;  %v3625_v33 = vpack.c.bf16 %v203_v26, %v203_v26 }
 0x112   :  { %v393_v27 = vsel %vm388_vm1, %v3614_v24, 0  ;;  %v2919_v30 = vpop.f32.mrf.mxu0  ;;  %v3628_v35 = vpack.c.bf16 %v2939_v25, %v2939_v25 }
 0x113   :  { %v331_v28 = vpop.f32.mrf.mxu1  ;;  %2941 = vmatpush3.bf16.xpose.msra.mxu0 %v393_v27  ;;  %v3652_v40 = vpack.c.bf16 %v2919_v30, %v2919_v30 }
 0x114   :  { %v3618_v29 = vpack.c.bf16 %v331_v28, %v331_v28  ;;  %2952 = vmatprep.subr.bf16.mxu0 %v3447_v20  ;;  %v206_v34 = vpop.f32.mrf.mxu0  ;;  %v531_v38 = vsel %vm388_vm1, %v3628_v35, 0 }
 0x115   :  { %v3636_v37 = vpack.c.bf16 %v206_v34, %v206_v34 }
 0x116   :  { %v439_v32 = vsel %vm388_vm1, %v3618_v29, 0 }
 0x117   :  { %2947 = vmatpush3.bf16.xpose.msra.mxu1 %v439_v32 }
 0x118   :  { %2958 = vmatprep.subr.bf16.mxu1 %v3447_v20 }
 0x11a   :  { %2943 = vmatmul.mubr.msk.bf16.vlgmr.msra.gmra.mxu0 %vm388_vm1, %v3625_v33 }
 0x11b   :  { %2953 = vmatpush3.bf16.xpose.msra.mxu0 %v485_v36  ;;  %2954 = vmatprep.mubr.msk.bf16.mxu0 %vm3448_vm0, %v3447_v20 }
 0x11c   :  { %2964 = vmatprep.subr.bf16.mxu0 %v3447_v20 }
 0x11e   :  { %2949 = vmatmul.mubr.msk.bf16.vlgmr.msra.gmra.mxu1 %vm388_vm1, %v3636_v37 }
 0x11f   :  { %2959 = vmatpush3.bf16.xpose.msra.mxu1 %v531_v38  ;;  %2960 = vmatprep.mubr.msk.bf16.mxu1 %vm3448_vm0, %v3447_v20 }
 0x120   :  { %2970 = vmatprep.subr.bf16.mxu1 %v3447_v20 }
 0x122   :  { %2955 = vmatmul.mubr.msk.bf16.vlgmr.msra.gmra.mxu0 %vm388_vm1, %v3645_v39 }
 0x123   :  { %2966 = vmatprep.mubr.msk.bf16.mxu0 %vm3448_vm0, %v3447_v20 }
 0x126   :  { %2961 = vmatmul.mubr.msk.bf16.vlgmr.msra.gmra.mxu1 %vm388_vm1, %v3652_v40 }
 0x127   :  { %2972 = vmatprep.mubr.msk.bf16.mxu1 %vm3448_vm0, %v3447_v20 }
 0x1da   :  { %v429_v52 = vpop.f32.mrf.mxu0 }
 0x1db   :  { %v430_v54 = vadd.f32 %v429_v52, %v3662_v50 }
 0x1dc   :  { %v2944_v56 = vpop.f32.mrf.mxu0 }
 0x1dd   :  { %v573_v58 = vsel %vm388_vm1, %v430_v54, -inf }
 0x1de   :  { %574 = vmax.xlane.f32.xlu0 %v573_v58  ;;  %v432_v59 = vpop.f32.mrf.mxu0  ;;  %v475_v60 = vpop.f32.mrf.mxu1 }
 0x1df   :  { %v476_v61 = vadd.f32 %v475_v60, %v3666_v55 }
 0x1e0   :  { %v2945_v63 = vpop.f32.mrf.mxu0  ;;  %v2950_v0 = vpop.f32.mrf.mxu1 }
 0x1e1   :  { %v576_v2 = vsel %vm388_vm1, %v476_v61, -inf }
 0x1e2   :  { %v521_v3 = vpop.f32.mrf.mxu0  ;;  %577 = vmax.xlane.f32.xlu0 %v576_v2  ;;  %v478_v4 = vpop.f32.mrf.mxu1 }
 0x1e3   :  { %v522_v5 = vadd.f32 %v521_v3, %v3671_v62 }
 0x1e4   :  { %v2951_v7 = vpop.f32.mrf.mxu1  ;;  %v2956_v8 = vpop.f32.mrf.mxu0 }
 0x1e5   :  { %v579_v9 = vsel %vm388_vm1, %v522_v5, -inf }
 0x1e6   :  { %580 = vmax.xlane.f32.xlu1 %v579_v9  ;;  %v524_v10 = vpop.f32.mrf.mxu0  ;;  %v567_v11 = vpop.f32.mrf.mxu1 }
 0x1e7   :  { %v568_v12 = vadd.f32 %v567_v11, %v3675_v6 }
 0x1e8   :  { %v2957_v13 = vpop.f32.mrf.mxu0  ;;  %v2962_v14 = vpop.f32.mrf.mxu1 }
 0x1e9   :  { %v582_v15 = vsel %vm388_vm1, %v568_v12, -inf }
 0x1ea   :  { %583 = vmax.xlane.f32.xlu1 %v582_v15  ;;  %v570_v16 = vpop.f32.mrf.mxu1 }
 0x1ec   :  { %v2963_v17 = vpop.f32.mrf.mxu1 }
 0x1fb   :  { %672 = vrot.lane.b32.xlu1 %v3618_v29, %s3450_s21 }
 0x1ff   :  { %721 = vrot.lane.b32.xlu1 %v3621_v31, %s3450_s21 }
 0x203   :  { %770 = vrot.lane.b32.xlu1 %v3628_v35, %s3450_s21 }
 0x267   :  { %v575_v18 = vpop.xlane.xlu0 %574 }
 0x268   :  { %v585_v19 = vsub.f32 %v430_v54, %v575_v18 }
 0x26a   :  { %v589_v21 = vmul.f32 1.442695, %v585_v19 }
 0x26b   :  { %v578_v22 = vpop.xlane.xlu0 %577 }
 0x26c   :  { %3271 = vpow2.f32 %v589_v21  ;;  %v586_v23 = vsub.f32 %v476_v61, %v578_v22 }
 0x26e   :  { %v591_v25 = vmul.f32 1.442695, %v586_v23 }
 0x26f   :  { %v581_v26 = vpop.xlane.xlu1 %580 }
 0x270   :  { %3273 = vpow2.f32 %v591_v25  ;;  %v587_v41 = vsub.f32 %v522_v5, %v581_v26 }
 0x272   :  { %v593_v43 = vmul.f32 1.442695, %v587_v41 }
 0x273   :  { %v584_v27 = vpop.xlane.xlu1 %583 }
 0x274   :  { %v588_v44 = vsub.f32 %v568_v12, %v584_v27  ;;  %3275 = vpow2.f32 %v593_v43 }
 0x276   :  { %v595_v45 = vmul.f32 1.442695, %v588_v44 }
 0x277   :  { %v673_v28 = vpop.permute.xlu1 %672 }
 0x278   :  { %v678_v30 = vsel %vm627_vm6, %v673_v28, 0  ;;  %3277 = vpow2.f32 %v595_v45 }
 0x279   :  { %v3272_v32 = vpop.eup %3271  ;;  %2971 = vmatpush3.bf16.msra.mxu1 %v678_v30 }
 0x27a   :  { %v597_v34 = vsel %vm388_vm1, %v3272_v32, 0.0  ;;  %2982 = vmatprep.subr.bf16.mxu1 %v3447_v20 }
 0x27b   :  { %598 = vadd.xlane.f32.xlu0 %v597_v34  ;;  %v722_v51 = vpop.permute.xlu1 %721 }
 0x27c   :  { %v727_v63 = vsel %vm627_vm6, %v722_v51, 0 }
 0x27d   :  { %v3274_v36 = vpop.eup %3273 }
 0x27e   :  { %v600_v38 = vsel %vm388_vm1, %v3274_v36, 0.0 }
 0x27f   :  { %601 = vadd.xlane.f32.xlu1 %v600_v38  ;;  %v771_v52 = vpop.permute.xlu1 %770 }
 0x280   :  { %v776_v2 = vsel %vm627_vm6, %v771_v52, 0 }
 0x281   :  { %v3276_v46 = vpop.eup %3275 }
 0x282   :  { %v603_v47 = vsel %vm388_vm1, %v3276_v46, 0.0 }
 0x285   :  { %v3278_v48 = vpop.eup %3277 }
 0x286   :  { %v606_v49 = vsel %vm388_vm1, %v3278_v48, 0.0 }
 0x290   :  { %872 = vrot.lane.b32.xlu1 %v3618_v29, %s3451_s3 }
 0x291   :  { %622 = vrot.lane.b32.xlu0 %v3614_v24, %s3450_s21 }
 0x2b0   :  { %604 = vadd.xlane.f32.xlu0 %v603_v47 }
 0x2b4   :  { %607 = vadd.xlane.f32.xlu1 %v606_v49 }
 0x2c5   :  { %870 = vrot.lane.b32.xlu1 %v3636_v37, %s3451_s3 }
 0x2c6   :  { %821 = vrot.lane.b32.xlu0 %v3614_v24, %s3451_s3 }
 0x2c9   :  { %974 = vrot.lane.b32.xlu1 %v3628_v35, %s3451_s3 }
 0x2ca   :  { %819 = vrot.lane.b32.xlu0 %v3625_v33, %s3451_s3 }
 0x2cd   :  { %972 = vrot.lane.b32.xlu1 %v3652_v40, %s3451_s3 }
 0x2ce   :  { %923 = vrot.lane.b32.xlu0 %v3621_v31, %s3451_s3 }
 0x2d2   :  { %921 = vrot.lane.b32.xlu0 %v3645_v39, %s3451_s3 }
 0x304   :  { %v599_v53 = vpop.xlane.xlu0 %598 }
 0x305   :  { %3279 = vrcp.f32 %v599_v53 }
 0x308   :  { %v623_v54 = vpop.permute.xlu0 %622  ;;  %v602_v56 = vpop.xlane.xlu1 %601 }
 0x309   :  { %v629_v57 = vsel %vm627_vm6, %v623_v54, 0  ;;  %3281 = vrcp.f32 %v602_v56 }
 0x30a   :  { %2965 = vmatpush3.bf16.msra.mxu0 %v629_v57 }
 0x30b   :  { %2976 = vmatprep.subr.bf16.mxu0 %v3447_v20 }
 0x30c   :  { %v873_v3 = vpop.permute.xlu1 %872 }
 0x30d   :  { %v878_v17 = vsel %vm388_vm1, %v873_v3, 0 }
 0x312   :  { %v3280_v58 = vpop.eup %3279 }
 0x313   :  { %v613_v59 = vmul.f32 %v3280_v58, %v3272_v32 }
 0x315   :  { %v617_v60 = vpack.c.bf16 %v613_v59, %v613_v59 }
 0x316   :  { %v3282_v61 = vpop.eup %3281 }
 0x317   :  { %2967 = vmatmul.mubr.msk.bf16.vlgmr.msra.gmra.mxu0 %vm388_vm1, %v617_v60  ;;  %v614_v0 = vmul.f32 %v3282_v61, %v3274_v36 }
 0x318   :  { %2977 = vmatpush3.bf16.msra.mxu0 %v727_v63  ;;  %2978 = vmatprep.mubr.msk.bf16.mxu0 %vm3448_vm0, %v3447_v20 }
 0x319   :  { %v618_v1 = vpack.c.bf16 %v614_v0, %v614_v0  ;;  %2988 = vmatprep.subr.bf16.mxu0 %v3447_v20 }
 0x31b   :  { %2973 = vmatmul.mubr.msk.bf16.vlgmr.msra.gmra.mxu1 %vm388_vm1, %v618_v1 }
 0x31c   :  { %2983 = vmatpush3.bf16.msra.mxu1 %v776_v2  ;;  %2984 = vmatprep.mubr.msk.bf16.mxu1 %vm3448_vm0, %v3447_v20 }
 0x31d   :  { %2994 = vmatprep.subr.bf16.mxu1 %v3447_v20 }
 0x339   :  { %v605_v4 = vpop.xlane.xlu0 %604 }
 0x33a   :  { %3283 = vrcp.f32 %v605_v4 }
 0x33d   :  { %v608_v5 = vpop.xlane.xlu1 %607  ;;  %v822_v7 = vpop.permute.xlu0 %821 }
 0x33e   :  { %3285 = vrcp.f32 %v608_v5  ;;  %v827_v13 = vsel %vm388_vm1, %v822_v7, 0 }
 0x341   :  { %v820_v12 = vpop.permute.xlu0 %819  ;;  %v871_v16 = vpop.permute.xlu1 %870 }
 0x345   :  { %v924_v18 = vpop.permute.xlu0 %923  ;;  %v975_v21 = vpop.permute.xlu1 %974 }
 0x346   :  { %v929_v19 = vsel %vm388_vm1, %v924_v18, 0  ;;  %v980_v22 = vsel %vm388_vm1, %v975_v21, 0 }
 0x347   :  { %v3284_v8 = vpop.eup %3283 }
 0x348   :  { %v615_v9 = vmul.f32 %v3284_v8, %v3276_v46 }
 0x349   :  { %v922_v23 = vpop.permute.xlu0 %921  ;;  %v973_v25 = vpop.permute.xlu1 %972 }
 0x34a   :  { %v619_v10 = vpack.c.bf16 %v615_v9, %v615_v9 }
 0x34b   :  { %v3286_v11 = vpop.eup %3285 }
 0x34c   :  { %2979 = vmatmul.mubr.msk.bf16.vlgmr.msra.gmra.mxu0 %vm388_vm1, %v619_v10  ;;  %v616_v14 = vmul.f32 %v3286_v11, %v3278_v48 }
 0x34d   :  { %2989 = vmatpush3.bf16.xpose.msra.mxu0 %v827_v13  ;;  %2990 = vmatprep.mubr.msk.bf16.mxu0 %vm3448_vm0, %v3447_v20 }
 0x34e   :  { %v620_v15 = vpack.c.bf16 %v616_v14, %v616_v14  ;;  %3000 = vmatprep.subr.bf16.mxu0 %v3447_v20 }
 0x350   :  { %2985 = vmatmul.mubr.msk.bf16.vlgmr.msra.gmra.mxu1 %vm388_vm1, %v620_v15 }
 0x351   :  { %2995 = vmatpush3.bf16.xpose.msra.mxu1 %v878_v17  ;;  %2996 = vmatprep.mubr.msk.bf16.mxu1 %vm3448_vm0, %v3447_v20 }
 0x352   :  { %3006 = vmatprep.subr.bf16.mxu1 %v3447_v20 }
 0x354   :  { %2991 = vmatmul.mubr.msk.bf16.vlgmr.msra.gmra.mxu0 %vm388_vm1, %v820_v12 }
 0x355   :  { %3001 = vmatpush3.bf16.xpose.msra.mxu0 %v929_v19  ;;  %3002 = vmatprep.mubr.msk.bf16.mxu0 %vm3448_vm0, %v3447_v20 }
 0x356   :  { %3012 = vmatprep.subr.bf16.mxu0 %v3447_v20 }
 0x358   :  { %2997 = vmatmul.mubr.msk.bf16.vlgmr.msra.gmra.mxu1 %vm388_vm1, %v871_v16 }
 0x359   :  { %3007 = vmatpush3.bf16.xpose.msra.mxu1 %v980_v22  ;;  %3008 = vmatprep.mubr.msk.bf16.mxu1 %vm3448_vm0, %v3447_v20 }
 0x35a   :  { %3018 = vmatprep.subr.bf16.mxu1 %v3447_v20 }
 0x35c   :  { %3003 = vmatmul.mubr.msk.bf16.vlgmr.msra.gmra.mxu0 %vm388_vm1, %v922_v23 }
 0x35d   :  { %3014 = vmatprep.mubr.msk.bf16.mxu0 %vm3448_vm0, %v3447_v20 }
 0x360   :  { %3009 = vmatmul.mubr.msk.bf16.vlgmr.msra.gmra.mxu1 %vm388_vm1, %v973_v25 }
 0x361   :  { %3020 = vmatprep.mubr.msk.bf16.mxu1 %vm3448_vm0, %v3447_v20 }
 0x3d7   :  { %v3736_v26 = vpop.f32.mrf.mxu0 }
 0x3d9   :  { %v2968_v27 = vpop.f32.mrf.mxu0 }
 0x3db   :  { %v668_v28 = vpop.f32.mrf.mxu0  ;;  %v3738_v30 = vpop.f32.mrf.mxu1 }
 0x3dd   :  { %v2969_v32 = vpop.f32.mrf.mxu0  ;;  %v2974_v34 = vpop.f32.mrf.mxu1 }
 0x3df   :  { %v717_v36 = vpop.f32.mrf.mxu1 }
 0x3e1   :  { %v2975_v38 = vpop.f32.mrf.mxu1 }
 0x40c   :  { %v3740_v41 = vpop.f32.mrf.mxu0 }
 0x40e   :  { %v2980_v43 = vpop.f32.mrf.mxu0 }
 0x410   :  { %v766_v44 = vpop.f32.mrf.mxu0  ;;  %v3742_v45 = vpop.f32.mrf.mxu1 }
 0x412   :  { %v2981_v46 = vpop.f32.mrf.mxu0  ;;  %v2986_v47 = vpop.f32.mrf.mxu1 }
 0x414   :  { %v815_v48 = vpop.f32.mrf.mxu1  ;;  %v863_v49 = vpop.f32.mrf.mxu0 }
 0x415   :  { %v864_v51 = vadd.f32 %v863_v49, %v3662_v50 }
 0x416   :  { %v2987_v52 = vpop.f32.mrf.mxu1  ;;  %v2992_v53 = vpop.f32.mrf.mxu0 }
 0x417   :  { %v1022_v54 = vsel %vm388_vm1, %v864_v51, -inf }
 0x418   :  { %1023 = vmax.xlane.f32.xlu0 %v1022_v54  ;;  %v866_v56 = vpop.f32.mrf.mxu0  ;;  %v914_v57 = vpop.f32.mrf.mxu1 }
 0x419   :  { %v915_v58 = vadd.f32 %v914_v57, %v3666_v55 }
 0x41a   :  { %v2993_v59 = vpop.f32.mrf.mxu0  ;;  %v2998_v60 = vpop.f32.mrf.mxu1 }
 0x41b   :  { %v1025_v61 = vsel %vm388_vm1, %v915_v58, -inf }
 0x41c   :  { %v965_v63 = vpop.f32.mrf.mxu0  ;;  %1026 = vmax.xlane.f32.xlu1 %v1025_v61  ;;  %v917_v0 = vpop.f32.mrf.mxu1 }
 0x41d   :  { %v966_v1 = vadd.f32 %v965_v63, %v3671_v62 }
 0x41e   :  { %v2999_v2 = vpop.f32.mrf.mxu1  ;;  %v3004_v3 = vpop.f32.mrf.mxu0 }
 0x41f   :  { %v1028_v4 = vsel %vm388_vm1, %v966_v1, -inf }
 0x420   :  { %1029 = vmax.xlane.f32.xlu0 %v1028_v4  ;;  %v968_v5 = vpop.f32.mrf.mxu0  ;;  %v1016_v7 = vpop.f32.mrf.mxu1 }
 0x421   :  { %v1017_v8 = vadd.f32 %v1016_v7, %v3675_v6 }
 0x422   :  { %v3005_v9 = vpop.f32.mrf.mxu0  ;;  %v3010_v10 = vpop.f32.mrf.mxu1 }
 0x423   :  { %v1031_v11 = vsel %vm388_vm1, %v1017_v8, -inf }
 0x424   :  { %1032 = vmax.xlane.f32.xlu0 %v1031_v11  ;;  %v1019_v12 = vpop.f32.mrf.mxu1 }
 0x426   :  { %v3011_v13 = vpop.f32.mrf.mxu1 }
 0x42d   :  { %1118 = vrot.lane.b32.xlu1 %v3618_v29, %s3452_s22 }
 0x431   :  { %1166 = vrot.lane.b32.xlu1 %v3621_v31, %s3452_s22 }
 0x435   :  { %1214 = vrot.lane.b32.xlu1 %v3628_v35, %s3452_s22 }
 0x4a1   :  { %v1024_v14 = vpop.xlane.xlu0 %1023 }
 0x4a2   :  { %v1034_v15 = vsub.f32 %v864_v51, %v1024_v14 }
 0x4a4   :  { %v1038_v16 = vmul.f32 1.442695, %v1034_v15 }
 0x4a5   :  { %v1027_v17 = vpop.xlane.xlu1 %1026 }
 0x4a6   :  { %3287 = vpow2.f32 %v1038_v16  ;;  %v1035_v18 = vsub.f32 %v915_v58, %v1027_v17 }
 0x4a8   :  { %v1040_v19 = vmul.f32 1.442695, %v1035_v18 }
 0x4a9   :  { %v1119_v21 = vpop.permute.xlu1 %1118  ;;  %v1030_v32 = vpop.xlane.xlu0 %1029 }
 0x4aa   :  { %3289 = vpow2.f32 %v1040_v19  ;;  %v1124_v22 = vsel %vm627_vm6, %v1119_v21, 0  ;;  %v1036_v34 = vsub.f32 %v966_v1, %v1030_v32 }
 0x4ab   :  { %3019 = vmatpush3.bf16.msra.mxu1 %v1124_v22 }
 0x4ac   :  { %3030 = vmatprep.subr.bf16.mxu1 %v3447_v20  ;;  %v1042_v38 = vmul.f32 1.442695, %v1036_v34 }
 0x4ad   :  { %v1033_v36 = vpop.xlane.xlu0 %1032  ;;  %v1167_v51 = vpop.permute.xlu1 %1166 }
 0x4ae   :  { %v1037_v43 = vsub.f32 %v1017_v8, %v1033_v36  ;;  %3291 = vpow2.f32 %v1042_v38  ;;  %v1172_v63 = vsel %vm627_vm6, %v1167_v51, 0 }
 0x4b0   :  { %v1044_v44 = vmul.f32 1.442695, %v1037_v43 }
 0x4b1   :  { %v1215_v52 = vpop.permute.xlu1 %1214 }
 0x4b2   :  { %3293 = vpow2.f32 %v1044_v44  ;;  %v1220_v2 = vsel %vm627_vm6, %v1215_v52, 0 }
 0x4b3   :  { %v3288_v23 = vpop.eup %3287 }
 0x4b4   :  { %v1046_v25 = vsel %vm388_vm1, %v3288_v23, 0.0 }
 0x4b5   :  { %1047 = vadd.xlane.f32.xlu0 %v1046_v25 }
 0x4b7   :  { %v3290_v27 = vpop.eup %3289 }
 0x4b8   :  { %v1049_v28 = vsel %vm388_vm1, %v3290_v27, 0.0 }
 0x4b9   :  { %1050 = vadd.xlane.f32.xlu1 %v1049_v28 }
 0x4bb   :  { %v3292_v46 = vpop.eup %3291 }
 0x4bc   :  { %v1052_v47 = vsel %vm388_vm1, %v3292_v46, 0.0 }
 0x4bf   :  { %v3294_v48 = vpop.eup %3293 }
 0x4c0   :  { %v1055_v49 = vsel %vm388_vm1, %v3294_v48, 0.0 }
 0x4ca   :  { %1314 = vrot.lane.b32.xlu1 %v3618_v29, %s3453_s23 }
 0x4cb   :  { %1070 = vrot.lane.b32.xlu0 %v3614_v24, %s3452_s22 }
 0x4ea   :  { %1053 = vadd.xlane.f32.xlu0 %v1052_v47 }
 0x4ee   :  { %1056 = vadd.xlane.f32.xlu1 %v1055_v49 }
 0x4ff   :  { %1312 = vrot.lane.b32.xlu1 %v3636_v37, %s3453_s23 }
 0x500   :  { %1264 = vrot.lane.b32.xlu0 %v3614_v24, %s3453_s23 }
 0x503   :  { %1414 = vrot.lane.b32.xlu1 %v3628_v35, %s3453_s23 }
 0x504   :  { %1262 = vrot.lane.b32.xlu0 %v3625_v33, %s3453_s23 }
 0x507   :  { %1412 = vrot.lane.b32.xlu1 %v3652_v40, %s3453_s23 }
 0x508   :  { %1364 = vrot.lane.b32.xlu0 %v3621_v31, %s3453_s23 }
 0x50c   :  { %1362 = vrot.lane.b32.xlu0 %v3645_v39, %s3453_s23 }
 0x53e   :  { %v1048_v53 = vpop.xlane.xlu0 %1047 }
 0x53f   :  { %3295 = vrcp.f32 %v1048_v53 }
 0x542   :  { %v1051_v54 = vpop.xlane.xlu1 %1050  ;;  %v1071_v56 = vpop.permute.xlu0 %1070 }
 0x543   :  { %3297 = vrcp.f32 %v1051_v54  ;;  %v1076_v57 = vsel %vm627_vm6, %v1071_v56, 0 }
 0x544   :  { %3013 = vmatpush3.bf16.msra.mxu0 %v1076_v57 }
 0x545   :  { %3024 = vmatprep.subr.bf16.mxu0 %v3447_v20 }
 0x546   :  { %v1315_v3 = vpop.permute.xlu1 %1314 }
 0x547   :  { %v1320_v17 = vsel %vm388_vm1, %v1315_v3, 0 }
 0x54c   :  { %v3296_v58 = vpop.eup %3295 }
 0x54d   :  { %v1062_v59 = vmul.f32 %v3296_v58, %v3288_v23 }
 0x54f   :  { %v1066_v60 = vpack.c.bf16 %v1062_v59, %v1062_v59 }
 0x550   :  { %v3298_v61 = vpop.eup %3297 }
 0x551   :  { %3015 = vmatmul.mubr.msk.bf16.vlgmr.msra.gmra.mxu0 %vm388_vm1, %v1066_v60  ;;  %v1063_v0 = vmul.f32 %v3298_v61, %v3290_v27 }
 0x552   :  { %3025 = vmatpush3.bf16.msra.mxu0 %v1172_v63  ;;  %3026 = vmatprep.mubr.msk.bf16.mxu0 %vm3448_vm0, %v3447_v20 }
 0x553   :  { %v1067_v1 = vpack.c.bf16 %v1063_v0, %v1063_v0  ;;  %3036 = vmatprep.subr.bf16.mxu0 %v3447_v20 }
 0x555   :  { %3021 = vmatmul.mubr.msk.bf16.vlgmr.msra.gmra.mxu1 %vm388_vm1, %v1067_v1 }
 0x556   :  { %3031 = vmatpush3.bf16.msra.mxu1 %v1220_v2  ;;  %3032 = vmatprep.mubr.msk.bf16.mxu1 %vm3448_vm0, %v3447_v20 }
 0x557   :  { %3042 = vmatprep.subr.bf16.mxu1 %v3447_v20 }
 0x573   :  { %v1054_v4 = vpop.xlane.xlu0 %1053 }
 0x574   :  { %3299 = vrcp.f32 %v1054_v4 }
 0x577   :  { %v1057_v5 = vpop.xlane.xlu1 %1056  ;;  %v1265_v7 = vpop.permute.xlu0 %1264 }
 0x578   :  { %3301 = vrcp.f32 %v1057_v5  ;;  %v1270_v13 = vsel %vm388_vm1, %v1265_v7, 0 }
 0x57b   :  { %v1263_v12 = vpop.permute.xlu0 %1262  ;;  %v1313_v16 = vpop.permute.xlu1 %1312 }
 0x57f   :  { %v1365_v18 = vpop.permute.xlu0 %1364  ;;  %v1415_v21 = vpop.permute.xlu1 %1414 }
 0x580   :  { %v1370_v19 = vsel %vm388_vm1, %v1365_v18, 0  ;;  %v1420_v22 = vsel %vm388_vm1, %v1415_v21, 0 }
 0x581   :  { %v3300_v8 = vpop.eup %3299 }
 0x582   :  { %v1064_v9 = vmul.f32 %v3300_v8, %v3292_v46 }
 0x583   :  { %v1363_v23 = vpop.permute.xlu0 %1362  ;;  %v1413_v25 = vpop.permute.xlu1 %1412 }
 0x584   :  { %v1068_v10 = vpack.c.bf16 %v1064_v9, %v1064_v9 }
 0x585   :  { %v3302_v11 = vpop.eup %3301 }
 0x586   :  { %3027 = vmatmul.mubr.msk.bf16.vlgmr.msra.gmra.mxu0 %vm388_vm1, %v1068_v10  ;;  %v1065_v14 = vmul.f32 %v3302_v11, %v3294_v48 }
 0x587   :  { %3037 = vmatpush3.bf16.xpose.msra.mxu0 %v1270_v13  ;;  %3038 = vmatprep.mubr.msk.bf16.mxu0 %vm3448_vm0, %v3447_v20 }
 0x588   :  { %v1069_v15 = vpack.c.bf16 %v1065_v14, %v1065_v14  ;;  %3048 = vmatprep.subr.bf16.mxu0 %v3447_v20 }
 0x58a   :  { %3033 = vmatmul.mubr.msk.bf16.vlgmr.msra.gmra.mxu1 %vm388_vm1, %v1069_v15 }
 0x58b   :  { %3043 = vmatpush3.bf16.xpose.msra.mxu1 %v1320_v17  ;;  %3044 = vmatprep.mubr.msk.bf16.mxu1 %vm3448_vm0, %v3447_v20 }
 0x58c   :  { %3054 = vmatprep.subr.bf16.mxu1 %v3447_v20 }
 0x58e   :  { %3039 = vmatmul.mubr.msk.bf16.vlgmr.msra.gmra.mxu0 %vm388_vm1, %v1263_v12 }
 0x58f   :  { %3049 = vmatpush3.bf16.xpose.msra.mxu0 %v1370_v19  ;;  %3050 = vmatprep.mubr.msk.bf16.mxu0 %vm3448_vm0, %v3447_v20 }
 0x590   :  { %3060 = vmatprep.subr.bf16.mxu0 %v3447_v20 }
 0x592   :  { %3045 = vmatmul.mubr.msk.bf16.vlgmr.msra.gmra.mxu1 %vm388_vm1, %v1313_v16 }
 0x593   :  { %3055 = vmatpush3.bf16.xpose.msra.mxu1 %v1420_v22  ;;  %3056 = vmatprep.mubr.msk.bf16.mxu1 %vm3448_vm0, %v3447_v20 }
 0x594   :  { %3066 = vmatprep.subr.bf16.mxu1 %v3447_v20 }
 0x596   :  { %3051 = vmatmul.mubr.msk.bf16.vlgmr.msra.gmra.mxu0 %vm388_vm1, %v1363_v23 }
 0x597   :  { %3062 = vmatprep.mubr.msk.bf16.mxu0 %vm3448_vm0, %v3447_v20 }
 0x59a   :  { %3057 = vmatmul.mubr.msk.bf16.vlgmr.msra.gmra.mxu1 %vm388_vm1, %v1413_v25 }
 0x59b   :  { %3068 = vmatprep.mubr.msk.bf16.mxu1 %vm3448_vm0, %v3447_v20 }
 0x611   :  { %v3808_v27 = vpop.f32.mrf.mxu0 }
 0x613   :  { %v3016_v28 = vpop.f32.mrf.mxu0 }
 0x615   :  { %v1115_v32 = vpop.f32.mrf.mxu0  ;;  %v3810_v34 = vpop.f32.mrf.mxu1 }
 0x616   :  { %v3201_v36 = vpack.i.bf16 %v3810_v34, %v3808_v27 }
 0x617   :  { %v3017_v38 = vpop.f32.mrf.mxu0  ;;  %v3022_v43 = vpop.f32.mrf.mxu1 }
 0x619   :  { %v1163_v44 = vpop.f32.mrf.mxu1 }
 0x61b   :  { %v3023_v46 = vpop.f32.mrf.mxu1 }
 0x646   :  { %v3814_v47 = vpop.f32.mrf.mxu0 }
 0x648   :  { %v3028_v48 = vpop.f32.mrf.mxu0 }
 0x64a   :  { %v1211_v49 = vpop.f32.mrf.mxu0  ;;  %v3816_v51 = vpop.f32.mrf.mxu1 }
 0x64b   :  { %v3206_v52 = vpack.i.bf16 %v3816_v51, %v3814_v47 }
 0x64c   :  { %v3029_v53 = vpop.f32.mrf.mxu0  ;;  %v3034_v54 = vpop.f32.mrf.mxu1 }
 0x64e   :  { %v1259_v56 = vpop.f32.mrf.mxu1  ;;  %v1306_v57 = vpop.f32.mrf.mxu0 }
 0x64f   :  { %v1307_v58 = vadd.f32 %v1306_v57, %v3662_v50 }
 0x650   :  { %v3035_v59 = vpop.f32.mrf.mxu1  ;;  %v3040_v60 = vpop.f32.mrf.mxu0 }
 0x651   :  { %v1462_v61 = vsel %vm388_vm1, %v1307_v58, -inf }
 0x652   :  { %1463 = vmax.xlane.f32.xlu0 %v1462_v61  ;;  %v1309_v63 = vpop.f32.mrf.mxu0  ;;  %v1356_v0 = vpop.f32.mrf.mxu1 }
 0x653   :  { %v1357_v1 = vadd.f32 %v1356_v0, %v3666_v55 }
 0x654   :  { %v3041_v2 = vpop.f32.mrf.mxu0  ;;  %v3046_v3 = vpop.f32.mrf.mxu1 }
 0x655   :  { %v1465_v4 = vsel %vm388_vm1, %v1357_v1, -inf }
 0x656   :  { %v1406_v5 = vpop.f32.mrf.mxu0  ;;  %1466 = vmax.xlane.f32.xlu1 %v1465_v4  ;;  %v1359_v7 = vpop.f32.mrf.mxu1 }
 0x657   :  { %v1407_v8 = vadd.f32 %v1406_v5, %v3671_v62 }
 0x658   :  { %v3047_v9 = vpop.f32.mrf.mxu1  ;;  %v3052_v10 = vpop.f32.mrf.mxu0 }
 0x659   :  { %v1468_v11 = vsel %vm388_vm1, %v1407_v8, -inf }
 0x65a   :  { %1469 = vmax.xlane.f32.xlu0 %v1468_v11  ;;  %v1409_v12 = vpop.f32.mrf.mxu0  ;;  %v1456_v13 = vpop.f32.mrf.mxu1 }
 0x65b   :  { %v1457_v14 = vadd.f32 %v1456_v13, %v3675_v6 }
 0x65c   :  { %v3053_v15 = vpop.f32.mrf.mxu0  ;;  %v3058_v16 = vpop.f32.mrf.mxu1 }
 0x65d   :  { %v1471_v17 = vsel %vm388_vm1, %v1457_v14, -inf }
 0x65e   :  { %1472 = vmax.xlane.f32.xlu0 %v1471_v17  ;;  %v1459_v18 = vpop.f32.mrf.mxu1 }
 0x660   :  { %v3059_v19 = vpop.f32.mrf.mxu1 }
 0x667   :  { %1558 = vrot.lane.b32.xlu1 %v3618_v29, %s3454_s24 }
 0x66b   :  { %1606 = vrot.lane.b32.xlu1 %v3621_v31, %s3454_s24 }
 0x66f   :  { %1654 = vrot.lane.b32.xlu1 %v3628_v35, %s3454_s24 }
 0x6db   :  { %v1464_v21 = vpop.xlane.xlu0 %1463 }
 0x6dc   :  { %v1474_v22 = vsub.f32 %v1307_v58, %v1464_v21 }
 0x6de   :  { %v1478_v23 = vmul.f32 1.442695, %v1474_v22 }
 0x6df   :  { %v1467_v25 = vpop.xlane.xlu1 %1466 }
 0x6e0   :  { %3303 = vpow2.f32 %v1478_v23  ;;  %v1475_v28 = vsub.f32 %v1357_v1, %v1467_v25 }
 0x6e2   :  { %v1480_v32 = vmul.f32 1.442695, %v1475_v28 }
 0x6e3   :  { %v1559_v38 = vpop.permute.xlu1 %1558  ;;  %v1470_v53 = vpop.xlane.xlu0 %1469 }
 0x6e4   :  { %3305 = vpow2.f32 %v1480_v32  ;;  %v1564_v43 = vsel %vm627_vm6, %v1559_v38, 0  ;;  %v1476_v54 = vsub.f32 %v1407_v8, %v1470_v53 }
 0x6e5   :  { %3067 = vmatpush3.bf16.msra.mxu1 %v1564_v43 }
 0x6e6   :  { %3078 = vmatprep.subr.bf16.mxu1 %v3447_v20  ;;  %v1482_v57 = vmul.f32 1.442695, %v1476_v54 }
 0x6e7   :  { %v1473_v56 = vpop.xlane.xlu0 %1472  ;;  %v1607_v1 = vpop.permute.xlu1 %1606 }
 0x6e8   :  { %v1477_v58 = vsub.f32 %v1457_v14, %v1473_v56  ;;  %3307 = vpow2.f32 %v1482_v57  ;;  %v1612_v9 = vsel %vm627_vm6, %v1607_v1, 0 }
 0x6ea   :  { %v1484_v59 = vmul.f32 1.442695, %v1477_v58 }
 0x6eb   :  { %v1655_v2 = vpop.permute.xlu1 %1654 }
 0x6ec   :  { %3309 = vpow2.f32 %v1484_v59  ;;  %v1660_v11 = vsel %vm627_vm6, %v1655_v2, 0 }
 0x6ed   :  { %v3304_v44 = vpop.eup %3303 }
 0x6ee   :  { %v1486_v46 = vsel %vm388_vm1, %v3304_v44, 0.0 }
 0x6ef   :  { %1487 = vadd.xlane.f32.xlu0 %v1486_v46 }
 0x6f1   :  { %v3306_v48 = vpop.eup %3305 }
 0x6f2   :  { %v1489_v49 = vsel %vm388_vm1, %v3306_v48, 0.0 }
 0x6f3   :  { %1490 = vadd.xlane.f32.xlu1 %v1489_v49 }
 0x6f5   :  { %v3308_v60 = vpop.eup %3307 }
 0x6f6   :  { %v1492_v61 = vsel %vm388_vm1, %v3308_v60, 0.0 }
 0x6f9   :  { %v3310_v63 = vpop.eup %3309 }
 0x6fa   :  { %v1495_v0 = vsel %vm388_vm1, %v3310_v63, 0.0 }
 0x704   :  { %1754 = vrot.lane.b32.xlu1 %v3618_v29, %s3455_s25 }
 0x705   :  { %1510 = vrot.lane.b32.xlu0 %v3614_v24, %s3454_s24 }
 0x724   :  { %1493 = vadd.xlane.f32.xlu0 %v1492_v61 }
 0x728   :  { %1496 = vadd.xlane.f32.xlu1 %v1495_v0 }
 0x739   :  { %1752 = vrot.lane.b32.xlu1 %v3636_v37, %s3455_s25 }
 0x73a   :  { %1704 = vrot.lane.b32.xlu0 %v3614_v24, %s3455_s25 }
 0x73d   :  { %1854 = vrot.lane.b32.xlu1 %v3628_v35, %s3455_s25 }
 0x73e   :  { %1702 = vrot.lane.b32.xlu0 %v3625_v33, %s3455_s25 }
 0x741   :  { %1852 = vrot.lane.b32.xlu1 %v3652_v40, %s3455_s25 }
 0x742   :  { %1804 = vrot.lane.b32.xlu0 %v3621_v31, %s3455_s25 }
 0x746   :  { %1802 = vrot.lane.b32.xlu0 %v3645_v39, %s3455_s25 }
 0x778   :  { %v1488_v3 = vpop.xlane.xlu0 %1487 }
 0x779   :  { %3311 = vrcp.f32 %v1488_v3 }
 0x77c   :  { %v1491_v4 = vpop.xlane.xlu1 %1490  ;;  %v1511_v5 = vpop.permute.xlu0 %1510 }
 0x77d   :  { %3313 = vrcp.f32 %v1491_v4  ;;  %v1516_v37 = vsel %vm627_vm6, %v1511_v5, 0 }
 0x77e   :  { %3061 = vmatpush3.bf16.msra.mxu0 %v1516_v37 }
 0x77f   :  { %3072 = vmatprep.subr.bf16.mxu0 %v3447_v20 }
 0x780   :  { %v1755_v12 = vpop.permute.xlu1 %1754 }
 0x781   :  { %v1760_v32 = vsel %vm388_vm1, %v1755_v12, 0 }
 0x786   :  { %v3312_v7 = vpop.eup %3311 }
 0x787   :  { %v1502_v33 = vmul.f32 %v3312_v7, %v3304_v44 }
 0x789   :  { %v1506_v8 = vpack.c.bf16 %v1502_v33, %v1502_v33 }
 0x78a   :  { %v3314_v40 = vpop.eup %3313 }
 0x78b   :  { %3063 = vmatmul.mubr.msk.bf16.vlgmr.msra.gmra.mxu0 %vm388_vm1, %v1506_v8  ;;  %v1503_v39 = vmul.f32 %v3314_v40, %v3306_v48 }
 0x78c   :  { %3073 = vmatpush3.bf16.msra.mxu0 %v1612_v9  ;;  %3074 = vmatprep.mubr.msk.bf16.mxu0 %vm3448_vm0, %v3447_v20 }
 0x78d   :  { %v1507_v10 = vpack.c.bf16 %v1503_v39, %v1503_v39  ;;  %3084 = vmatprep.subr.bf16.mxu0 %v3447_v20 }
 0x78f   :  { %3069 = vmatmul.mubr.msk.bf16.vlgmr.msra.gmra.mxu1 %vm388_vm1, %v1507_v10 }
 0x790   :  { %3079 = vmatpush3.bf16.msra.mxu1 %v1660_v11  ;;  %3080 = vmatprep.mubr.msk.bf16.mxu1 %vm3448_vm0, %v3447_v20 }
 0x791   :  { %3090 = vmatprep.subr.bf16.mxu1 %v3447_v20 }
 0x7ad   :  { %v1494_v13 = vpop.xlane.xlu0 %1493 }
 0x7ae   :  { %3315 = vrcp.f32 %v1494_v13 }
 0x7b1   :  { %v1497_v14 = vpop.xlane.xlu1 %1496  ;;  %v1705_v15 = vpop.permute.xlu0 %1704 }
 0x7b2   :  { %3317 = vrcp.f32 %v1497_v14  ;;  %v1710_v22 = vsel %vm388_vm1, %v1705_v15, 0 }
 0x7b5   :  { %v1703_v21 = vpop.permute.xlu0 %1702  ;;  %v1753_v28 = vpop.permute.xlu1 %1752 }
 0x7b9   :  { %v1805_v38 = vpop.permute.xlu0 %1804  ;;  %v1855_v44 = vpop.permute.xlu1 %1854 }
 0x7ba   :  { %v1810_v43 = vsel %vm388_vm1, %v1805_v38, 0  ;;  %v1860_v46 = vsel %vm388_vm1, %v1855_v44, 0 }
 0x7bb   :  { %v3316_v16 = vpop.eup %3315 }
 0x7bc   :  { %v1504_v17 = vmul.f32 %v3316_v16, %v3308_v60 }
 0x7bd   :  { %v1803_v48 = vpop.permute.xlu0 %1802  ;;  %v1853_v49 = vpop.permute.xlu1 %1852 }
 0x7be   :  { %v1508_v18 = vpack.c.bf16 %v1504_v17, %v1504_v17 }
 0x7bf   :  { %v3318_v19 = vpop.eup %3317 }
 0x7c0   :  { %3075 = vmatmul.mubr.msk.bf16.vlgmr.msra.gmra.mxu0 %vm388_vm1, %v1508_v18  ;;  %v1505_v23 = vmul.f32 %v3318_v19, %v3310_v63 }
 0x7c1   :  { %3085 = vmatpush3.bf16.xpose.msra.mxu0 %v1710_v22  ;;  %3086 = vmatprep.mubr.msk.bf16.mxu0 %vm3448_vm0, %v3447_v20 }
 0x7c2   :  { %v1509_v25 = vpack.c.bf16 %v1505_v23, %v1505_v23  ;;  %3096 = vmatprep.subr.bf16.mxu0 %v3447_v20 }
 0x7c4   :  { %3081 = vmatmul.mubr.msk.bf16.vlgmr.msra.gmra.mxu1 %vm388_vm1, %v1509_v25 }
 0x7c5   :  { %3091 = vmatpush3.bf16.xpose.msra.mxu1 %v1760_v32  ;;  %3092 = vmatprep.mubr.msk.bf16.mxu1 %vm3448_vm0, %v3447_v20 }
 0x7c6   :  { %3102 = vmatprep.subr.bf16.mxu1 %v3447_v20 }
 0x7c8   :  { %3087 = vmatmul.mubr.msk.bf16.vlgmr.msra.gmra.mxu0 %vm388_vm1, %v1703_v21 }
 0x7c9   :  { %3097 = vmatpush3.bf16.xpose.msra.mxu0 %v1810_v43  ;;  %3098 = vmatprep.mubr.msk.bf16.mxu0 %vm3448_vm0, %v3447_v20 }
 0x7ca   :  { %3108 = vmatprep.subr.bf16.mxu0 %v3447_v20 }
 0x7cc   :  { %3093 = vmatmul.mubr.msk.bf16.vlgmr.msra.gmra.mxu1 %vm388_vm1, %v1753_v28 }
 0x7cd   :  { %3103 = vmatpush3.bf16.xpose.msra.mxu1 %v1860_v46  ;;  %3104 = vmatprep.mubr.msk.bf16.mxu1 %vm3448_vm0, %v3447_v20 }
 0x7ce   :  { %3114 = vmatprep.subr.bf16.mxu1 %v3447_v20 }
 0x7d0   :  { %3099 = vmatmul.mubr.msk.bf16.vlgmr.msra.gmra.mxu0 %vm388_vm1, %v1803_v48 }
 0x7d1   :  { %3110 = vmatprep.mubr.msk.bf16.mxu0 %vm3448_vm0, %v3447_v20 }
 0x7d4   :  { %3105 = vmatmul.mubr.msk.bf16.vlgmr.msra.gmra.mxu1 %vm388_vm1, %v1853_v49 }
 0x7d5   :  { %3116 = vmatprep.mubr.msk.bf16.mxu1 %vm3448_vm0, %v3447_v20 }
 0x84b   :  { %v3884_v53 = vpop.f32.mrf.mxu0 }
 0x84d   :  { %v3064_v54 = vpop.f32.mrf.mxu0 }
 0x84f   :  { %v1555_v56 = vpop.f32.mrf.mxu0  ;;  %v3886_v57 = vpop.f32.mrf.mxu1 }
 0x850   :  { %v3211_v58 = vpack.i.bf16 %v3886_v57, %v3884_v53 }
 0x851   :  { %v3065_v59 = vpop.f32.mrf.mxu0  ;;  %v3070_v60 = vpop.f32.mrf.mxu1 }
 0x853   :  { %v1603_v61 = vpop.f32.mrf.mxu1 }
 0x855   :  { %v3071_v63 = vpop.f32.mrf.mxu1 }
 0x880   :  { %v3890_v0 = vpop.f32.mrf.mxu0 }
 0x882   :  { %v3076_v1 = vpop.f32.mrf.mxu0 }
 0x884   :  { %v1651_v2 = vpop.f32.mrf.mxu0  ;;  %v3892_v3 = vpop.f32.mrf.mxu1 }
 0x885   :  { %v3216_v4 = vpack.i.bf16 %v3892_v3, %v3890_v0 }
 0x886   :  { %v3077_v5 = vpop.f32.mrf.mxu0  ;;  %v3082_v37 = vpop.f32.mrf.mxu1 }
 0x888   :  { %v1699_v7 = vpop.f32.mrf.mxu1  ;;  %v1746_v33 = vpop.f32.mrf.mxu0 }
 0x889   :  { %v1747_v8 = vadd.f32 %v1746_v33, %v3662_v50 }
 0x88a   :  { %v3083_v40 = vpop.f32.mrf.mxu1  ;;  %v3088_v9 = vpop.f32.mrf.mxu0 }
 0x88b   :  { %v1902_v39 = vsel %vm388_vm1, %v1747_v8, -inf }
 0x88c   :  { %1903 = vmax.xlane.f32.xlu0 %v1902_v39  ;;  %v1749_v10 = vpop.f32.mrf.mxu0  ;;  %v1796_v11 = vpop.f32.mrf.mxu1 }
 0x88d   :  { %v1797_v12 = vadd.f32 %v1796_v11, %v3666_v55 }
 0x88e   :  { %v3089_v13 = vpop.f32.mrf.mxu0  ;;  %v3094_v14 = vpop.f32.mrf.mxu1 }
 0x88f   :  { %v1905_v15 = vsel %vm388_vm1, %v1797_v12, -inf }
 0x890   :  { %v1846_v16 = vpop.f32.mrf.mxu0  ;;  %1906 = vmax.xlane.f32.xlu1 %v1905_v15  ;;  %v1799_v17 = vpop.f32.mrf.mxu1 }
 0x891   :  { %v1847_v18 = vadd.f32 %v1846_v16, %v3671_v62  ;;  %v3251_v16 = vld [vmem:[#allocation8 + $0x8] sm:$0xff]  }
 0x892   :  { %v3095_v19 = vpop.f32.mrf.mxu1  ;;  %v3100_v50 = vpop.f32.mrf.mxu0 }
 0x893   :  { %v1908_v21 = vsel %vm388_vm1, %v1847_v18, -inf }
 0x894   :  { %1909 = vmax.xlane.f32.xlu0 %v1908_v21  ;;  %v1849_v22 = vpop.f32.mrf.mxu0  ;;  %v1896_v23 = vpop.f32.mrf.mxu1 }
 0x895   :  { %v1897_v25 = vadd.f32 %v1896_v23, %v3675_v6 }
 0x896   :  { %v3101_v28 = vpop.f32.mrf.mxu0  ;;  %v3106_v55 = vpop.f32.mrf.mxu1 }
 0x897   :  { %v1911_v32 = vsel %vm388_vm1, %v1897_v25, -inf }
 0x898   :  { %1912 = vmax.xlane.f32.xlu0 %v1911_v32  ;;  %v1899_v38 = vpop.f32.mrf.mxu1 }
 0x89a   :  { %v3107_v43 = vpop.f32.mrf.mxu1 }
 0x89b   :  { %v3252_v43 = vld [vmem:[#allocation8] sm:$0xff]  }
 0x915   :  { %v1904_v44 = vpop.xlane.xlu0 %1903 }
 0x916   :  { %v1914_v46 = vsub.f32 %v1747_v8, %v1904_v44 }
 0x918   :  { %v1918_v48 = vmul.f32 1.442695, %v1914_v46 }
 0x919   :  { %v1907_v62 = vpop.xlane.xlu1 %1906 }
 0x91a   :  { %3319 = vpow2.f32 %v1918_v48  ;;  %v1915_v49 = vsub.f32 %v1797_v12, %v1907_v62 }
 0x91c   :  { %v1920_v54 = vmul.f32 1.442695, %v1915_v49 }
 0x91d   :  { %v1910_v56 = vpop.xlane.xlu0 %1909 }
 0x91e   :  { %3321 = vpow2.f32 %v1920_v54  ;;  %v1916_v59 = vsub.f32 %v1847_v18, %v1910_v56 }
 0x920   :  { %v1922_v60 = vmul.f32 1.442695, %v1916_v59 }
 0x921   :  { %v1913_v37 = vpop.xlane.xlu0 %1912 }
 0x922   :  { %3323 = vpow2.f32 %v1922_v60  ;;  %v1917_v7 = vsub.f32 %v1897_v25, %v1913_v37 }
 0x924   :  { %v1924_v33 = vmul.f32 1.442695, %v1917_v7 }
 0x926   :  { %3325 = vpow2.f32 %v1924_v33 }
 0x927   :  { %v3320_v6 = vpop.eup %3319 }
 0x928   :  { %v1926_v61 = vsel %vm388_vm1, %v3320_v6, 0.0 }
 0x929   :  { %1927 = vadd.xlane.f32.xlu0 %v1926_v61 }
 0x92b   :  { %v3322_v63 = vpop.eup %3321 }
 0x92c   :  { %v1929_v1 = vsel %vm388_vm1, %v3322_v63, 0.0 }
 0x92d   :  { %1930 = vadd.xlane.f32.xlu1 %v1929_v1 }
 0x92f   :  { %v3324_v2 = vpop.eup %3323 }
 0x930   :  { %v1932_v5 = vsel %vm388_vm1, %v3324_v2, 0.0 }
 0x931   :  { %1933 = vadd.xlane.f32.xlu0 %v1932_v5 }
 0x93e   :  { %1998 = vrot.lane.b32.xlu1 %v3618_v29, %s3456_s6  ;;  %v3326_v29 = vpop.eup %3325 }
 0x942   :  { %2046 = vrot.lane.b32.xlu1 %v3621_v31, %s3456_s6  ;;  %v1935_v31 = vsel %vm388_vm1, %v3326_v29, 0.0 }
 0x947   :  { %1950 = vrot.lane.b32.xlu0 %v3614_v24, %s3456_s6 }
 0x94b   :  { %3202 = vrot.lane.b32.xlu0 %v3201_v36, %s3457_s0 }
 0x94f   :  { %3212 = vrot.lane.b32.xlu0 %v3211_v58, %s3458_s26 }
 0x966   :  { %1936 = vadd.xlane.f32.xlu1 %v1935_v31 }
 0x977   :  { %2094 = vrot.lane.b32.xlu1 %v3628_v35, %s3456_s6 }
 0x97b   :  { %3207 = vrot.lane.b32.xlu1 %v3206_v52, %s3457_s0 }
 0x97f   :  { %3217 = vrot.lane.b32.xlu1 %v3216_v4, %s3458_s26 }
 0x9b2   :  { %v1928_v24 = vpop.xlane.xlu0 %1927 }
 0x9b3   :  { %3327 = vrcp.f32 %v1928_v24 }
 0x9b6   :  { %v1931_v27 = vpop.xlane.xlu1 %1930 }
 0x9b7   :  { %3329 = vrcp.f32 %v1931_v27 }
 0x9ba   :  { %v1999_v34 = vpop.permute.xlu1 %1998  ;;  %v1934_v36 = vpop.xlane.xlu0 %1933 }
 0x9bb   :  { %v2004_v53 = vsel %vm627_vm6, %v1999_v34, 0  ;;  %3331 = vrcp.f32 %v1934_v36 }
 0x9bc   :  { %3115 = vmatpush3.bf16.msra.mxu1 %v2004_v53 }
 0x9bd   :  { %3126 = vmatprep.subr.bf16.mxu1 %v3447_v20 }
 0x9be   :  { %v1951_v35 = vpop.permute.xlu0 %1950  ;;  %v2047_v57 = vpop.permute.xlu1 %2046 }
 0x9bf   :  { %v1956_v47 = vsel %vm627_vm6, %v1951_v35, 0  ;;  %v2052_v3 = vsel %vm627_vm6, %v2047_v57, 0 }
 0x9c0   :  { %v3328_v51 = vpop.eup %3327  ;;  %3109 = vmatpush3.bf16.msra.mxu0 %v1956_v47 }
 0x9c1   :  { %3120 = vmatprep.subr.bf16.mxu0 %v3447_v20  ;;  %v1942_v52 = vmul.f32 %v3328_v51, %v3320_v6 }
 0x9c2   :  { %v3203_v54 = vpop.permute.xlu0 %3202 }
 0x9c3   :  { %v1946_v58 = vpack.c.bf16 %v1942_v52, %v1942_v52  ;;  %v3205_v59 = vunpack.i.h.bf16 %v3203_v54  ;;  %v3204_v60 = vunpack.i.l.bf16 %v3203_v54 }
 0x9c4   :  { %v3330_v0 = vpop.eup %3329 }
 0x9c5   :  { %3111 = vmatmul.mubr.msk.bf16.vlgmr.msra.gmra.mxu0 %vm388_vm1, %v1946_v58  ;;  %v1943_v4 = vmul.f32 %v3330_v0, %v3322_v63  ;;  %v2191_v1 = vsel %vm388_vm1, %v3738_v30, %v3205_v59 }
 0x9c6   :  { %3121 = vmatpush3.bf16.msra.mxu0 %v2052_v3  ;;  %3122 = vmatprep.mubr.msk.bf16.mxu0 %vm3448_vm0, %v3447_v20  ;;  %v3213_v56 = vpop.permute.xlu0 %3212 }
 0x9c7   :  { %v1947_v8 = vpack.c.bf16 %v1943_v4, %v1943_v4  ;;  %3132 = vmatprep.subr.bf16.mxu0 %v3251_v16  ;;  %v3215_v6 = vunpack.i.h.bf16 %v3213_v56  ;;  %v3214_v61 = vunpack.i.l.bf16 %v3213_v56 }
 0x9c8   :  { %v3332_v40 = vpop.eup %3331 }
 0x9c9   :  { %3117 = vmatmul.mubr.msk.bf16.vlgmr.msra.gmra.mxu1 %vm388_vm1, %v1947_v8  ;;  %v1944_v9 = vmul.f32 %v3332_v40, %v3324_v2  ;;  %v2190_v2 = vsel %vm388_vm1, %v3736_v26, %v3204_v60  ;;  %v2196_v33 = vsel %vm2194_vm7, %v2191_v1, %v3215_v6  ;;  %v3253_v1 = vld [vmem:[%s4093_s7 + $0x38] sm:$0xff]  }
 0x9ca   :  { %3128 = vmatprep.mubr.msk.bf16.mxu1 %vm3448_vm0, %v3447_v20  ;;  %v2195_v7 = vsel %vm2194_vm7, %v2190_v2, %v3214_v61  ;;  %v3254_v2 = vld [vmem:[%s4093_s7 + $0x30] sm:$0xff]  }
 0x9cb   :  { %v1948_v39 = vpack.c.bf16 %v1944_v9, %v1944_v9 }
 0x9cd   :  { %3123 = vmatmul.mubr.msk.bf16.vlgmr.msra.gmra.mxu0 %vm388_vm1, %v1948_v39 }
 0x9ce   :  { %3133 = vmatpush3.bf16.msra.mxu0 %v3251_v16 }
 0x9cf   :  { %3134 = vmatprep.subr.bf16.mxu0 %v3252_v43 }
 0x9d2   :  { %3135 = vmatpush3.bf16.msra.mxu0 %v3252_v43 }
 0x9ef   :  { %v1937_v10 = vpop.xlane.xlu1 %1936 }
 0x9f0   :  { %3333 = vrcp.f32 %v1937_v10 }
 0x9f3   :  { %v2095_v11 = vpop.permute.xlu1 %2094 }
 0x9f4   :  { %v2100_v12 = vsel %vm627_vm6, %v2095_v11, 0 }
 0x9f5   :  { %3127 = vmatpush3.bf16.msra.mxu1 %v2100_v12 }
 0x9f6   :  { %3140 = vmatprep.subr.bf16.mxu1 %v3253_v1 }
 0x9f7   :  { %v3208_v27 = vpop.permute.xlu1 %3207 }
 0x9f8   :  { %v3210_v30 = vunpack.i.h.bf16 %v3208_v27  ;;  %v3209_v36 = vunpack.i.l.bf16 %v3208_v27  ;;  %v3262_v27 = vld [vmem:[%s4095_s9 + $0x30] sm:$0xff]  }
 0x9fa   :  { %v2193_v47 = vsel %vm388_vm1, %v3742_v45, %v3210_v30  ;;  %v2192_v51 = vsel %vm388_vm1, %v3740_v41, %v3209_v36  ;;  %v3351_v45 = vld [vmem:[%s4088_s2] sm:$0xff]   ;;  %v3352_v41 = vld [vmem:[%s4088_s2 + $0x8] sm:$0xff]   ;;  %v3265_v36 = vld [vmem:[%s4095_s9 + $0x18] sm:$0xff]  }
 0x9fb   :  { %v3218_v34 = vpop.permute.xlu1 %3217  ;;  %v2279_v40 = vunpack.c.l.bf16 %v3351_v45  ;;  %v2281_v39 = vunpack.c.l.bf16 %v3352_v41  ;;  %v2280_v11 = vunpack.c.h.bf16 %v3351_v45  ;;  %v3264_v30 = vld [vmem:[%s4095_s9 + $0x20] sm:$0xff]  }
 0x9fc   :  { %v3220_v53 = vunpack.i.h.bf16 %v3218_v34  ;;  %v3219_v26 = vunpack.i.l.bf16 %v3218_v34  ;;  %v3263_v34 = vld [vmem:[%s4095_s9 + $0x28] sm:$0xff]  }
 0x9fd   :  { %v3334_v13 = vpop.eup %3333 }
 0x9fe   :  { %v1945_v14 = vmul.f32 %v3334_v13, %v3326_v29  ;;  %v2197_v58 = vsel %vm2194_vm7, %v2192_v51, %v3219_v26  ;;  %v2198_v0 = vsel %vm2194_vm7, %v2193_v47, %v3220_v53 }
 0xa00   :  { %v1949_v15 = vpack.c.bf16 %v1945_v14, %v1945_v14 }
 0xa02   :  { %3129 = vmatmul.mubr.msk.bf16.vlgmr.msra.gmra.mxu1 %vm388_vm1, %v1949_v15  ;;  %v2282_v15 = vunpack.c.h.bf16 %v3352_v41 }
 0xa03   :  { %3141 = vmatpush3.bf16.msra.mxu1 %v3253_v1 }
 0xa04   :  { %3142 = vmatprep.subr.bf16.mxu1 %v3254_v2 }
 0xa07   :  { %3143 = vmatpush3.bf16.msra.mxu1 %v3254_v2  ;;  %v2781_v2 = vld [vmem:[%s4096_s10] ss:$0 sm:$0xff] }
 0xa85   :  { %v1992_v17 = vpop.f32.mrf.mxu0 }
 0xa87   :  { %v3112_v18 = vpop.f32.mrf.mxu0 }
 0xa89   :  { %v1995_v20 = vpop.f32.mrf.mxu0  ;;  %v2040_v19 = vpop.f32.mrf.mxu1 }
 0xa8a   :  { %v3221_v50 = vpack.i.bf16 %v2040_v19, %v1992_v17 }
 0xa8b   :  { %v3113_v21 = vpop.f32.mrf.mxu0  ;;  %v3118_v22 = vpop.f32.mrf.mxu1 }
 0xa8c   :  { %3222 = vrot.lane.b32.xlu0 %v3221_v50, %s3459_s27 }
 0xa8d   :  { %v2043_v23 = vpop.f32.mrf.mxu1  ;;  %v2088_v25 = vpop.f32.mrf.mxu0 }
 0xa8f   :  { %v3119_v28 = vpop.f32.mrf.mxu1  ;;  %v3124_v55 = vpop.f32.mrf.mxu0 }
 0xa91   :  { %v2091_v32 = vpop.f32.mrf.mxu0 }
 0xa93   :  { %v3125_v38 = vpop.f32.mrf.mxu0 }
 0xac2   :  { %v2136_v44 = vpop.f32.mrf.mxu1 }
 0xac3   :  { %v3226_v46 = vpack.i.bf16 %v2136_v44, %v2088_v25 }
 0xac4   :  { %v3130_v48 = vpop.f32.mrf.mxu1 }
 0xac5   :  { %3227 = vrot.lane.b32.xlu1 %v3226_v46, %s3459_s27 }
 0xac6   :  { %v2139_v62 = vpop.f32.mrf.mxu1 }
 0xac8   :  { %v3131_v49 = vpop.f32.mrf.mxu1 }
 0xafe   :  { %v3223_v63 = vpop.permute.xlu0 %3222 }
 0xaff   :  { %v3225_v5 = vunpack.i.h.bf16 %v3223_v63  ;;  %v3224_v37 = vunpack.i.l.bf16 %v3223_v63 }
 0xb01   :  { %v2201_v29 = vsel %vm2199_vm8, %v2196_v33, %v3225_v5  ;;  %v2200_v31 = vsel %vm2199_vm8, %v2195_v7, %v3224_v37  ;;  %v3255_v5 = vld [vmem:[%s4093_s7 + $0x28] sm:$0xff]   ;;  %v3256_v37 = vld [vmem:[%s4093_s7 + $0x20] sm:$0xff]   ;;  %v3257_v7 = vld [vmem:[%s4093_s7 + $0x18] sm:$0xff]  }
 0xb02   :  { %v2204_v24 = vpack.c.bf16 %v2201_v29, %v2200_v31  ;;  %3144 = vmatprep.subr.bf16.mxu1 %v3255_v5  ;;  %v3258_v33 = vld [vmem:[%s4093_s7 + $0x10] sm:$0xff]   ;;  %v3259_v29 = vld [vmem:[%s4093_s7 + $0x8] sm:$0xff]   ;;  %v3260_v31 = vld [vmem:[%s4093_s7] sm:$0xff]  }
 0xb03   :  { %3145 = vmatpush3.bf16.msra.mxu1 %v3255_v5 }
 0xb04   :  { %3136 = vmatprep.mubr.msk.bf16.mxu0 %vm2222_vm9, %v2204_v24  ;;  %3146 = vmatprep.subr.bf16.mxu1 %v3256_v37  ;;  %v3261_v24 = vld [vmem:[%s4095_s9 + $0x38] sm:$0xff]  }
 0xb05   :  { %3160 = vmatprep.subr.bf16.mxu0 %v3261_v24 }
 0xb07   :  { %3147 = vmatpush3.bf16.msra.mxu1 %v3256_v37 }
 0xb08   :  { %3148 = vmatprep.subr.bf16.mxu1 %v3257_v7 }
 0xb0b   :  { %3149 = vmatpush3.bf16.msra.mxu1 %v3257_v7 }
 0xb0c   :  { %3150 = vmatprep.subr.bf16.mxu1 %v3258_v33 }
 0xb0f   :  { %3151 = vmatpush3.bf16.msra.mxu1 %v3258_v33 }
 0xb10   :  { %3152 = vmatprep.subr.bf16.mxu1 %v3259_v29 }
 0xb13   :  { %3153 = vmatpush3.bf16.msra.mxu1 %v3259_v29 }
 0xb14   :  { %3154 = vmatprep.subr.bf16.mxu1 %v3260_v31 }
 0xb17   :  { %3155 = vmatpush3.bf16.msra.mxu1 %v3260_v31 }
 0xb37   :  { %v3228_v35 = vpop.permute.xlu1 %3227 }
 0xb38   :  { %v3230_v52 = vunpack.i.h.bf16 %v3228_v35  ;;  %v3229_v57 = vunpack.i.l.bf16 %v3228_v35 }
 0xb3a   :  { %v2203_v3 = vsel %vm2199_vm8, %v2198_v0, %v3230_v52  ;;  %v2202_v4 = vsel %vm2199_vm8, %v2197_v58, %v3229_v57 }
 0xb3b   :  { %v2205_v8 = vpack.c.bf16 %v2203_v3, %v2202_v4 }
 0xb3d   :  { %3137 = vmatmul.mubr.msk.bf16.vlgmr.msra.gmra.mxu0 %vm2222_vm9, %v2205_v8 }
 0xb3e   :  { %3161 = vmatpush3.bf16.msra.mxu0 %v3261_v24 }
 0xb3f   :  { %3162 = vmatprep.subr.bf16.mxu0 %v3262_v27 }
 0xb42   :  { %3163 = vmatpush3.bf16.msra.mxu0 %v3262_v27 }
 0xb43   :  { %3164 = vmatprep.subr.bf16.mxu0 %v3263_v34 }
 0xb46   :  { %3165 = vmatpush3.bf16.msra.mxu0 %v3263_v34 }
 0xb47   :  { %3166 = vmatprep.subr.bf16.mxu0 %v3264_v30 }
 0xb4a   :  { %3167 = vmatpush3.bf16.msra.mxu0 %v3264_v30 }
 0xb4b   :  { %3168 = vmatprep.subr.bf16.mxu0 %v3265_v36 }
 0xb4e   :  { %3169 = vmatpush3.bf16.msra.mxu0 %v3265_v36 }
 0xbfd   :  { %v3138_v9 = vpop.f32.mrf.mxu0 }
 0xbfe   :  { %v2285_v14 = vadd.f32 %v3138_v9, %v2281_v39  ;;  %v2770_v9 = vld [vmem:[%s4097_s11] ss:$0 sm:$0xff] }
 0xbff   :  { %v2263_v10 = vpop.f32.mrf.mxu0 }
 0xc00   :  { %v2283_v12 = vadd.f32 %v2279_v40, %v2263_v10  ;;  %v2293_v19 = vsel %vm2278_vm10, %v2285_v14, 0.0 }
 0xc01   :  { %v3139_v13 = vpop.f32.mrf.mxu0 }
 0xc02   :  { %v2291_v16 = vsel %vm2278_vm10, %v2283_v12, 0.0  ;;  %v2286_v20 = vadd.f32 %v3139_v13, %v2282_v15  ;;  %v2771_v13 = vld [vmem:[%s4098_s12] ss:$0 sm:$0xff] }
 0xc03   :  { %2295 = vadd.xlane.f32.xlu0 %v2291_v16  ;;  %v2266_v17 = vpop.f32.mrf.mxu0 }
 0xc04   :  { %v2284_v18 = vadd.f32 %v2280_v11, %v2266_v17  ;;  %v2294_v21 = vsel %vm2278_vm10, %v2286_v20, 0.0 }
 0xc06   :  { %v2292_v50 = vsel %vm2278_vm10, %v2284_v18, 0.0 }
 0xc07   :  { %2299 = vadd.xlane.f32.xlu0 %v2293_v19  ;;  %2297 = vadd.xlane.f32.xlu1 %v2292_v50 }
 0xc0b   :  { %2301 = vadd.xlane.f32.xlu0 %v2294_v21 }
 0xc8c   :  { %v2296_v22 = vpop.xlane.xlu0 %2295 }
 0xc8d   :  { %v2303_v23 = vmul.f32 0.03125, %v2296_v22 }
 0xc8f   :  { %v2307_v25 = vsub.f32 %v2283_v12, %v2303_v23 }
 0xc90   :  { %v2300_v28 = vpop.xlane.xlu0 %2299  ;;  %v2298_v55 = vpop.xlane.xlu1 %2297 }
 0xc91   :  { %v2305_v32 = vmul.f32 0.03125, %v2300_v28  ;;  %v2304_v38 = vmul.f32 0.03125, %v2298_v55  ;;  %v3975_v43 = vsel %vm2278_vm10, %v2307_v25, 0.0  ;;  %v3266_v25 = vld [vmem:[%s4095_s9 + $0x10] sm:$0xff]   ;;  %v3267_v28 = vld [vmem:[%s4095_s9 + $0x8] sm:$0xff]   ;;  %v3268_v55 = vld [vmem:[%s4095_s9] sm:$0xff]  }
 0xc92   :  { %v2315_v44 = vmul.f32 %v3975_v43, %v3975_v43  ;;  %3170 = vmatprep.subr.bf16.mxu0 %v3266_v25 }
 0xc93   :  { %v2309_v46 = vsub.f32 %v2285_v14, %v2305_v32  ;;  %v2308_v48 = vsub.f32 %v2284_v18, %v2304_v38  ;;  %3171 = vmatpush3.bf16.msra.mxu0 %v3266_v25 }
 0xc94   :  { %2319 = vadd.xlane.f32.xlu0 %v2315_v44  ;;  %v2302_v62 = vpop.xlane.xlu0 %2301  ;;  %3172 = vmatprep.subr.bf16.mxu0 %v3267_v28 }
 0xc95   :  { %v2306_v49 = vmul.f32 0.03125, %v2302_v62  ;;  %v3981_v54 = vsel %vm2278_vm10, %v2309_v46, 0.0  ;;  %v3985_v56 = vsel %vm2278_vm10, %v2308_v48, 0.0 }
 0xc96   :  { %v2317_v59 = vmul.f32 %v3981_v54, %v3981_v54  ;;  %v2316_v60 = vmul.f32 %v3985_v56, %v3985_v56 }
 0xc97   :  { %v2310_v6 = vsub.f32 %v2286_v20, %v2306_v49  ;;  %3173 = vmatpush3.bf16.msra.mxu0 %v3267_v28 }
 0xc98   :  { %2323 = vadd.xlane.f32.xlu0 %v2317_v59  ;;  %2321 = vadd.xlane.f32.xlu1 %v2316_v60 }
 0xc99   :  { %v3993_v61 = vsel %vm2278_vm10, %v2310_v6, 0.0  ;;  %3174 = vmatprep.subr.bf16.mxu0 %v3268_v55 }
 0xc9a   :  { %v2318_v63 = vmul.f32 %v3993_v61, %v3993_v61 }
 0xc9b   :  { %3175 = vmatpush3.bf16.msra.mxu0 %v3268_v55 }
 0xc9c   :  { %2325 = vadd.xlane.f32.xlu1 %v2318_v63 }
 0xd1d   :  { %v2320_v53 = vpop.xlane.xlu0 %2319 }
 0xd1e   :  { %v2327_v26 = vmul.f32 0.03125, %v2320_v53 }
 0xd20   :  { %v2331_v35 = vadd.f32 1e-05, %v2327_v26 }
 0xd21   :  { %v2324_v47 = vpop.xlane.xlu0 %2323  ;;  %v2322_v51 = vpop.xlane.xlu1 %2321 }
 0xd22   :  { %3335 = vrsqrt.f32 %v2331_v35  ;;  %v2329_v52 = vmul.f32 0.03125, %v2324_v47  ;;  %v2328_v57 = vmul.f32 0.03125, %v2322_v51 }
 0xd24   :  { %v2333_v58 = vadd.f32 1e-05, %v2329_v52  ;;  %v2332_v0 = vadd.f32 1e-05, %v2328_v57 }
 0xd25   :  { %v2326_v3 = vpop.xlane.xlu1 %2325 }
 0xd26   :  { %3337 = vrsqrt.f32 %v2333_v58  ;;  %v2330_v4 = vmul.f32 0.03125, %v2326_v3 }
 0xd27   :  { %3339 = vrsqrt.f32 %v2332_v0 }
 0xd28   :  { %v2334_v8 = vadd.f32 1e-05, %v2330_v4 }
 0xd2a   :  { %3341 = vrsqrt.f32 %v2334_v8 }
 0xd2f   :  { %v3336_v45 = vpop.eup %3335 }
 0xd30   :  { %v2339_v40 = vmul.f32 %v3336_v45, %v3975_v43  ;;  %v2772_v43 = vld [vmem:[%s4094_s8] ss:$0 sm:$0xff] }
 0xd32   :  { %v2349_v12 = vmul.f32 %v2770_v9, %v2339_v40 }
 0xd33   :  { %v3338_v41 = vpop.eup %3337 }
 0xd34   :  { %v3340_v39 = vpop.eup %3339  ;;  %v2341_v10 = vmul.f32 %v3338_v41, %v3981_v54  ;;  %v2359_v18 = vadd.f32 %v2771_v13, %v2349_v12 }
 0xd35   :  { %v2340_v11 = vmul.f32 %v3340_v39, %v3985_v56 }
 0xd36   :  { %v2351_v17 = vmul.f32 %v2770_v9, %v2341_v10 }
 0xd37   :  { %v3342_v14 = vpop.eup %3341  ;;  %v2350_v15 = vmul.f32 %v2770_v9, %v2340_v11 }
 0xd38   :  { %v2342_v16 = vmul.f32 %v3342_v14, %v3993_v61  ;;  %v2361_v21 = vadd.f32 %v2771_v13, %v2351_v17 }
 0xd39   :  { %v2360_v20 = vadd.f32 %v2771_v13, %v2350_v15 }
 0xd3a   :  { %v2352_v19 = vmul.f32 %v2770_v9, %v2342_v16 }
 0xd3b   :  { %v2363_v50 = vpack.c.bf16 %v2360_v20, %v2359_v18 }
 0xd3c   :  { %v2362_v22 = vadd.f32 %v2771_v13, %v2352_v19 }
 0xd3d   :  { %3156 = vmatprep.mubr.bf16.mxu1 %v2363_v50 }
 0xd3e   :  { %v2364_v23 = vpack.c.bf16 %v2362_v22, %v2361_v21 }
 0xd40   :  { %3157 = vmatmul.mubr.bf16.vlgmr.msra.gmra.mxu1 %v2364_v23 }
 0xe00   :  { %v3158_v32 = vpop.f32.mrf.mxu1 }
 0xe01   :  { %v2479_v62 = vadd.f32 %v3158_v32, %v2772_v43 }
 0xe02   :  { %v2470_v38 = vpop.f32.mrf.mxu1 }
 0xe03   :  { %v2471_v46 = vadd.f32 %v2772_v43, %v2470_v38  ;;  %v2487_v6 = vmax.f32 %v2479_v62, 0.0  ;;  %v2790_v38 = vld [vmem:[%s4099_s13] ss:$0 sm:$0xff]  ;;  %s2698_s13 = sshll.u32 %s3460_s28, 4  ;;  %s2699_s13 = int_to_ptr.vmem [resolvable:$true] %s2698_s13 }
 0xe04   :  { %v3159_v44 = vpop.f32.mrf.mxu1  ;;  %p3418_p2 = scmp.lt.s32.totalorder %s2699_s13, %s2699_s13 }
 0xe05   :  { %v2482_v48 = vadd.f32 %v3159_v44, %v2772_v43  ;;  %v2485_v59 = vmax.f32 %v2471_v46, 0.0  ;;  %v2791_v44 = vld [vmem:[%s4100_s14] ss:$0 sm:$0xff]  ;;  %s3413_s14 = scalar_lea.vmem %s2699_s13, 512 }
 0xe06   :  { %v2473_v49 = vpop.f32.mrf.mxu1  ;;  %p3414_p1 = scmp.ne.s32.totalorder %s2699_s13, %s3413_s14  ;;  %p3419_p3 = scmp.lt.s32.totalorder %s3413_s14, %s3413_s14 }
 0xe07   :  { %v2474_v54 = vadd.f32 %v2772_v43, %v2473_v49  ;;  %v2488_v56 = vmax.f32 %v2482_v48, 0.0 }
 0xe08   :  { %p3420_p4 = por %p3419_p3, %p3418_p2 }
 0xe09   :  { %v2486_v60 = vmax.f32 %v2474_v54, 0.0  ;;  %v2490_v63 = vpack.c.bf16 %v2488_v56, %v2487_v6 }
 0xe0a   :  { %p3421_p5 = pnand %p3420_p4, %p3414_p1 }
 0xe0b   :  { %v2489_v61 = vpack.c.bf16 %v2486_v60, %v2485_v59 }
 0xe0d   :  { %3176 = vmatprep.mubr.bf16.mxu0 %v2489_v61 }
 0xe0e   :  { %3177 = vmatmul.mubr.bf16.vlgmr.msra.gmra.mxu0 %v2490_v63 }
 0xece   :  { %v3178_v1 = vpop.f32.mrf.mxu0 }
 0xecf   :  { %v2605_v37 = vadd.f32 %v3178_v1, %v2781_v2 }
 0xed0   :  { %v2596_v5 = vpop.f32.mrf.mxu0 }
 0xed1   :  { %v2597_v7 = vadd.f32 %v2781_v2, %v2596_v5  ;;  %v2613_v30 = vadd.f32 %v2605_v37, %v2361_v21 }
 0xed2   :  { %v3179_v33 = vpop.f32.mrf.mxu0 }
 0xed3   :  { %v2611_v29 = vadd.f32 %v2597_v7, %v2359_v18  ;;  %v2608_v24 = vadd.f32 %v3179_v33, %v2781_v2  ;;  %v2619_v26 = vsel %vm2278_vm10, %v2613_v30, 0.0 }
 0xed4   :  { %v2599_v31 = vpop.f32.mrf.mxu0 }
 0xed5   :  { %v2600_v27 = vadd.f32 %v2781_v2, %v2599_v31  ;;  %v2617_v34 = vsel %vm2278_vm10, %v2611_v29, 0.0  ;;  %v2614_v35 = vadd.f32 %v2608_v24, %v2362_v22 }
 0xed6   :  { %2621 = vadd.xlane.f32.xlu0 %v2617_v34 }
 0xed7   :  { %v2612_v36 = vadd.f32 %v2600_v27, %v2360_v20  ;;  %v2620_v47 = vsel %vm2278_vm10, %v2614_v35, 0.0 }
 0xed9   :  { %v2618_v53 = vsel %vm2278_vm10, %v2612_v36, 0.0 }
 0xeda   :  { %2623 = vadd.xlane.f32.xlu1 %v2618_v53  ;;  %2625 = vadd.xlane.f32.xlu0 %v2619_v26 }
 0xede   :  { %2627 = vadd.xlane.f32.xlu1 %v2620_v47 }
 0xf5f   :  { %v2622_v51 = vpop.xlane.xlu0 %2621 }
 0xf60   :  { %v2629_v52 = vmul.f32 0.03125, %v2622_v51 }
 0xf62   :  { %v2633_v57 = vsub.f32 %v2611_v29, %v2629_v52 }
 0xf63   :  { %v2624_v58 = vpop.xlane.xlu1 %2623  ;;  %v2626_v0 = vpop.xlane.xlu0 %2625 }
 0xf64   :  { %v2630_v3 = vmul.f32 0.03125, %v2624_v58  ;;  %v2631_v4 = vmul.f32 0.03125, %v2626_v0  ;;  %v2637_v8 = vsel %vm2278_vm10, %v2633_v57, 0.0 }
 0xf65   :  { %v2641_v45 = vmul.f32 %v2637_v8, %v2637_v8 }
 0xf66   :  { %v2634_v40 = vsub.f32 %v2612_v36, %v2630_v3  ;;  %v2635_v9 = vsub.f32 %v2613_v30, %v2631_v4 }
 0xf67   :  { %v2628_v41 = vpop.xlane.xlu1 %2627  ;;  %2645 = vadd.xlane.f32.xlu0 %v2641_v45 }
 0xf68   :  { %v2632_v39 = vmul.f32 0.03125, %v2628_v41  ;;  %v2638_v10 = vsel %vm2278_vm10, %v2634_v40, 0.0  ;;  %v2639_v11 = vsel %vm2278_vm10, %v2635_v9, 0.0 }
 0xf69   :  { %v2642_v12 = vmul.f32 %v2638_v10, %v2638_v10  ;;  %v2643_v13 = vmul.f32 %v2639_v11, %v2639_v11 }
 0xf6a   :  { %v2636_v14 = vsub.f32 %v2614_v35, %v2632_v39 }
 0xf6b   :  { %2647 = vadd.xlane.f32.xlu1 %v2642_v12  ;;  %2649 = vadd.xlane.f32.xlu0 %v2643_v13 }
 0xf6c   :  { %v2640_v15 = vsel %vm2278_vm10, %v2636_v14, 0.0 }
 0xf6d   :  { %v2644_v16 = vmul.f32 %v2640_v15, %v2640_v15 }
 0xf6f   :  { %2651 = vadd.xlane.f32.xlu1 %v2644_v16 }
 0xff0   :  { %v2646_v17 = vpop.xlane.xlu0 %2645 }
 0xff1   :  { %v2653_v18 = vmul.f32 0.03125, %v2646_v17 }
 0xff3   :  { %v2657_v20 = vadd.f32 1e-05, %v2653_v18 }
 0xff4   :  { %v2648_v19 = vpop.xlane.xlu1 %2647  ;;  %v2650_v50 = vpop.xlane.xlu0 %2649 }
 0xff5   :  { %3343 = vrsqrt.f32 %v2657_v20  ;;  %v2654_v21 = vmul.f32 0.03125, %v2648_v19  ;;  %v2655_v22 = vmul.f32 0.03125, %v2650_v50 }
 0xff7   :  { %v2658_v23 = vadd.f32 1e-05, %v2654_v21  ;;  %v2659_v25 = vadd.f32 1e-05, %v2655_v22 }
 0xff8   :  { %v2652_v28 = vpop.xlane.xlu1 %2651 }
 0xff9   :  { %3345 = vrsqrt.f32 %v2658_v23  ;;  %v2656_v55 = vmul.f32 0.03125, %v2652_v28 }
 0xffa   :  { %3347 = vrsqrt.f32 %v2659_v25 }
 0xffb   :  { %v2660_v32 = vadd.f32 1e-05, %v2656_v55 }
 0xffd   :  { %3349 = vrsqrt.f32 %v2660_v32 }
0x1002   :  { %v3344_v42 = vpop.eup %3343 }
0x1003   :  { %v2665_v43 = vmul.f32 %v3344_v42, %v2637_v8 }
0x1005   :  { %v2675_v46 = vmul.f32 %v2790_v38, %v2665_v43 }
0x1006   :  { %v3346_v48 = vpop.eup %3345 }
0x1007   :  { %v3348_v62 = vpop.eup %3347  ;;  %v2666_v49 = vmul.f32 %v3346_v48, %v2638_v10  ;;  %v2685_v54 = vadd.f32 %v2791_v44, %v2675_v46 }
0x1008   :  { %v2667_v56 = vmul.f32 %v3348_v62, %v2639_v11 }
0x1009   :  { %v2676_v59 = vmul.f32 %v2790_v38, %v2666_v49  ;;  %2689 = vst [vmem:[#allocation10] sm:$0xff] %v2685_v54 }
0x100a   :  { %v3350_v60 = vpop.eup %3349  ;;  %v2677_v6 = vmul.f32 %v2790_v38, %v2667_v56 }
0x100b   :  { %v2668_v61 = vmul.f32 %v3350_v60, %v2640_v15  ;;  %v2686_v63 = vadd.f32 %v2791_v44, %v2676_v59 }
0x100c   :  { %v2687_v1 = vadd.f32 %v2791_v44, %v2677_v6 }
0x100d   :  { %v2678_v2 = vmul.f32 %v2790_v38, %v2668_v61  ;;  %2690 = vst [vmem:[#allocation10 + $0x8] sm:$0xff] %v2686_v63 }
0x100e   :  { %2691 = vst [vmem:[#allocation10 + $0x10] sm:$0xff] %v2687_v1 }
0x100f   :  { %v2688_v5 = vadd.f32 %v2791_v44, %v2678_v2 }
0x1011   :  { %2692 = vst [vmem:[#allocation10 + $0x18] sm:$0xff] %v2688_v5 }
0x1012   :  { %3424 = shalt.err (!%p3421_p5)
}
0x1013   :  { %s3461_s29 = smov 128  }
0x1014   :  { %2704 = dma.vmem_to_hbm [thread:$0]  %s2699_s13, 512, %s4101_s15, [#allocation7], %s3461_s29, %s3461_s29, %s3457_s0  }
0x1015   :  { %3439 = dma.done.wait [#allocation7], 512  }
0x1016   :  { %3440 = vsyncadd [#allocation7], 4294966784 }
0x1017   :  { %2708 = vsyncpa [#allocation6], 1 }
0x1018   :  { %2709 = vsyncpa [#allocation9], 1 }
0x1019   :  { %2710 = vsyncpa [#allocation7], 1 }

</bundles_post_ra>
